<compile_context>
chip_gen: v5e
topology: v5e:2x2
jax: 0.10.0
libtpu: 0.0.40
codegen_flags: <defaults>
</compile_context>

<pallas_src>
import jax
import jax.numpy as jnp
from jax.experimental import pallas as pl
from jax.experimental.pallas import tpu as pltpu


def _discriminator_kernel(x_ref, w1_ref, pk_ref, out_ref, acc_ref):
    # x_ref:  [B, tk] f32      w1_ref: [tk, H] bf16
    # pk_ref: [4, H]  f32      rows = gamma, beta, dw(=w2[:,1]-w2[:,0]), db(broadcast)
    # out_ref:[B, 2]  f32      acc_ref: [B, H] f32 scratch (resident across grid)
    k = pl.program_id(0)

    @pl.when(k == 0)
    def _():
        acc_ref[...] = jnp.zeros_like(acc_ref)

    # Linear 1 partial product on the MXU (bf16 inputs, f32 accumulate).
    # The Linear bias b1 is intentionally omitted: training-mode BatchNorm
    # mean subtraction cancels it exactly.
    acc_ref[...] += jnp.dot(
        x_ref[...].astype(jnp.bfloat16), w1_ref[...],
        preferred_element_type=jnp.float32)

    @pl.when(k == pl.num_programs(0) - 1)
    def _():
        h = acc_ref[...]                                   # [B, H] f32
        gamma = pk_ref[0:1, :]                             # [1, H]
        beta = pk_ref[1:2, :]                              # [1, H]
        dw = pk_ref[2:3, :]                                # [1, H]
        db = pk_ref[3:4, 0:1]                              # [1, 1]

        # BatchNorm1d, training-mode semantics: biased batch stats, eps=1e-5.
        mean = jnp.mean(h, axis=0, keepdims=True)                       # [1, H]
        var = jnp.mean((h - mean) * (h - mean), axis=0, keepdims=True)  # [1, H]
        scale = gamma * jax.lax.rsqrt(var + 1e-5)                       # [1, H]
        shift = beta - mean * scale                                     # [1, H]
        h_bn = h * scale + shift                                        # [B, H]

        # sigmoid(x) = 0.5 * tanh(0.5 * x) + 0.5  (single EUP op).
        a = 0.5 * jnp.tanh(0.5 * h_bn) + 0.5

        # 2-class softmax(l) == [1 - p, p] with p = sigmoid(l1 - l0),
        # l1 - l0 = a @ dw + db  -> VPU broadcast-mul + lane reduce.
        d = jnp.sum(a * dw, axis=-1, keepdims=True) + db   # [B, 1]
        p1 = 0.5 * jnp.tanh(0.5 * d) + 0.5

        # Two slice stores; avoids materializing a lane-axis concat.
        out_ref[:, 0:1] = 1.0 - p1
        out_ref[:, 1:2] = p1


def prepare_discriminator_params(w1, b1, gamma, beta, w2, b2):
    """One-time weight prep (hoisted out of the forward hot path).

    Weights stored as [in_features, out_features] (torch weight transposed).
    b1 is accepted for interface parity but is cancelled exactly by the
    training-mode BatchNorm batch-mean subtraction, so it is never shipped.
    """
    del b1
    H = w1.shape[1]
    w1_bf16 = w1.astype(jnp.bfloat16)                       # cached bf16 weights
    dw = (w2[:, 1] - w2[:, 0]).astype(jnp.float32)          # [H]
    db = (b2[1] - b2[0]).astype(jnp.float32)                # scalar
    packed = jnp.stack([
        gamma.astype(jnp.float32),
        beta.astype(jnp.float32),
        dw,
        jnp.full((H,), db, jnp.float32),
    ], axis=0)                                              # [4, H]
    return w1_bf16, packed


@jax.jit
def discriminator_forward(x, w1_bf16, packed):
    """x: [B, C, Hs, Ws] float32 feature map (output of BasicFeatExtractor)."""
    B = x.shape[0]
    x_flat = x.reshape(B, -1)          # same row-major flatten as torch .view
    D = x_flat.shape[1]
    H = w1_bf16.shape[1]

    # K tile: single step at small D; pipelined double-buffered weight DMA
    # (and bounded VMEM on v7x) when D grows.
    tk = D if D <= 2048 else 2048
    assert D % tk == 0 and tk % 128 == 0 and H % 128 == 0

    cost = pl.CostEstimate(
        flops=2 * B * D * H + 4 * B * H,
        transcendentals=B * H + B,
        bytes_accessed=4 * B * D + 2 * D * H + 4 * 4 * H + 4 * B * 2,
    )

    return pl.pallas_call(
        _discriminator_kernel,
        out_shape=jax.ShapeDtypeStruct((B, 2), jnp.float32),
        grid=(D // tk,),
        in_specs=[
            pl.BlockSpec((B, tk), lambda k: (0, k)),    # x (f32, cast in-kernel)
            pl.BlockSpec((tk, H), lambda k: (k, 0)),    # w1 (cached bf16)
            pl.BlockSpec((4, H), lambda k: (0, 0)),     # packed gamma/beta/dw/db
        ],
        out_specs=pl.BlockSpec((B, 2), lambda k: (0, 0)),
        scratch_shapes=[pltpu.VMEM((B, H), jnp.float32)],
        compiler_params=pltpu.CompilerParams(
            dimension_semantics=("arbitrary",)),
        cost_estimate=cost,
    )(x_flat, w1_bf16, packed)


def init_params(key, input_size):
    """Deterministic synthetic init mirroring nn.Linear / nn.BatchNorm1d shapes.

    Linear weights stored as [in_features, out_features] (transposed vs torch).
    """
    hidden = input_size // 2
    k1, k2, k3, k4 = jax.random.split(key, 4)
    bound1 = 1.0 / jnp.sqrt(input_size)
    bound2 = 1.0 / jnp.sqrt(hidden)
    w1 = jax.random.uniform(k1, (input_size, hidden), jnp.float32, -bound1, bound1)
    b1 = jax.random.uniform(k2, (hidden,), jnp.float32, -bound1, bound1)
    gamma = jnp.ones((hidden,), jnp.float32)   # BatchNorm1d weight init
    beta = jnp.zeros((hidden,), jnp.float32)   # BatchNorm1d bias init
    w2 = jax.random.uniform(k3, (hidden, 2), jnp.float32, -bound2, bound2)
    b2 = jax.random.uniform(k4, (2,), jnp.float32, -bound2, bound2)
    return w1, b1, gamma, beta, w2, b2


def _reference_forward(x, w1, b1, gamma, beta, w2, b2):
    """Pure-JAX f32 reference matching PyTorch training-mode semantics."""
    B = x.shape[0]
    xf = x.reshape(B, -1)
    h = xf @ w1 + b1
    mean = jnp.mean(h, axis=0, keepdims=True)
    var = jnp.mean((h - mean) ** 2, axis=0, keepdims=True)
    h_bn = (h - mean) * jax.lax.rsqrt(var + 1e-5) * gamma + beta
    a = jax.nn.sigmoid(h_bn)
    logits = a @ w2 + b2
    return jax.nn.softmax(logits, axis=-1)


if __name__ == "__main__":
    # params.image_scale = 16 -> BasicFeatExtractor output is [B, 16, 8, 8]
    # -> Discriminator input_size = 16 * 8 * 8 = 1024, hidden = 512.
    B, C, Hs, Ws = 8, 16, 8, 8
    input_size = C * Hs * Ws

    key = jax.random.PRNGKey(0)
    kx, kp = jax.random.split(key)
    x = jax.random.normal(kx, (B, C, Hs, Ws), jnp.float32)
    w1, b1, gamma, beta, w2, b2 = init_params(kp, input_size)

    # Weight prep happens once; only x, cached bf16 w1 and the packed row
    # block travel to the kernel per forward call.
    w1_bf16, packed = prepare_discriminator_params(w1, b1, gamma, beta, w2, b2)

    out = discriminator_forward(x, w1_bf16, packed)
    out = jax.block_until_ready(out)

    assert out.shape == (B, 2)
    # Probabilities: each row sums to 1 (exact by construction, up to f32).
    assert jnp.allclose(jnp.sum(out, axis=-1), 1.0, atol=1e-5)
    # Match the f32 reference (bf16 first matmul -> loose tolerance).
    ref = _reference_forward(x, w1, b1, gamma, beta, w2, b2)
    assert jnp.allclose(out, ref, atol=5e-2), float(jnp.max(jnp.abs(out - ref)))
    print("KERNEL_OK")
</pallas_src>

<mosaic_0001>
module attributes {stable_mosaic.version = 11 : i64} {
  func.func @_discriminator_kernel(%arg0: i32, %arg1: memref<8x1024xf32, #tpu.memory_space<vmem>>, %arg2: memref<1024x512xbf16, #tpu.memory_space<vmem>>, %arg3: memref<4x512xf32, #tpu.memory_space<vmem>>, %arg4: memref<8x2xf32, #tpu.memory_space<vmem>>, %arg5: memref<8x512xf32, #tpu.memory_space<vmem>>) attributes {dimension_semantics = [#tpu.dimension_semantics<arbitrary>], iteration_bounds = array<i64: 1>, scalar_prefetch = 0 : i64, scratch_operands = 1 : i64, tpu.core_type = #tpu.core_type<tc>, window_params = [{transform_indices = @transform_0, window_bounds = array<i64: 8, 1024>}, {transform_indices = @transform_1, window_bounds = array<i64: 1024, 512>}, {pipeline_mode = #tpu.pipeline_mode<synchronous>, transform_indices = @transform_2, window_bounds = array<i64: 4, 512>}, {pipeline_mode = #tpu.pipeline_mode<synchronous>, transform_indices = @transform_3, window_bounds = array<i64: 8, 2>}]} {
    %c0_i32 = arith.constant 0 : i32
    %0 = arith.cmpi eq, %arg0, %c0_i32 : i32
    %1 = arith.extui %0 : i1 to i32
    %c0_i32_0 = arith.constant 0 : i32
    %2 = arith.cmpi ne, %1, %c0_i32_0 : i32
    scf.if %2 {
      %cst_10 = arith.constant 0.000000e+00 : f32
      %13 = vector.broadcast %cst_10 : f32 to vector<8x512xf32>
      %c0_11 = arith.constant 0 : index
      %c0_12 = arith.constant 0 : index
      %14 = vector.load %arg5[%c0_11, %c0_12] : memref<8x512xf32, #tpu.memory_space<vmem>>, vector<8x512xf32>
      tpu.vector_store %arg5[%c0_11, %c0_12], %13 {strides = array<i32>} : memref<8x512xf32, #tpu.memory_space<vmem>>, vector<8x512xf32>,
    } else {
    }
    %c0 = arith.constant 0 : index
    %c0_1 = arith.constant 0 : index
    %3 = vector.load %arg5[%c0, %c0_1] : memref<8x512xf32, #tpu.memory_space<vmem>>, vector<8x512xf32>
    %c0_2 = arith.constant 0 : index
    %c0_3 = arith.constant 0 : index
    %4 = vector.load %arg1[%c0_2, %c0_3] : memref<8x1024xf32, #tpu.memory_space<vmem>>, vector<8x1024xf32>
    %5 = arith.truncf %4 : vector<8x1024xf32> to vector<8x1024xbf16>
    %c0_4 = arith.constant 0 : index
    %c0_5 = arith.constant 0 : index
    %6 = vector.load %arg2[%c0_4, %c0_5] : memref<1024x512xbf16, #tpu.memory_space<vmem>>, vector<1024x512xbf16>
    %cst = arith.constant dense<0.000000e+00> : vector<8x512xf32>
    %7 = tpu.matmul %5, %6, %cst {dimension_numbers = #tpu.dot_dimension_numbers<[1], [0], [0], [1], [0, 0, 1, 1], [], []>} : vector<8x1024xbf16>, vector<1024x512xbf16>, vector<8x512xf32> -> vector<8x512xf32>
    %8 = arith.addf %3, %7 : vector<8x512xf32>
    %c0_6 = arith.constant 0 : index
    %c0_7 = arith.constant 0 : index
    %9 = vector.load %arg5[%c0_6, %c0_7] : memref<8x512xf32, #tpu.memory_space<vmem>>, vector<8x512xf32>
    tpu.vector_store %arg5[%c0_6, %c0_7], %8 {strides = array<i32>} : memref<8x512xf32, #tpu.memory_space<vmem>>, vector<8x512xf32>,
    %c0_i32_8 = arith.constant 0 : i32
    %10 = arith.cmpi eq, %arg0, %c0_i32_8 : i32
    %11 = arith.extui %10 : i1 to i32
    %c0_i32_9 = arith.constant 0 : i32
    %12 = arith.cmpi ne, %11, %c0_i32_9 : i32
    scf.if %12 {
      %c0_10 = arith.constant 0 : index
      %c0_11 = arith.constant 0 : index
      %13 = vector.load %arg5[%c0_10, %c0_11] : memref<8x512xf32, #tpu.memory_space<vmem>>, vector<8x512xf32>
      %c0_12 = arith.constant 0 : index
      %c0_13 = arith.constant 0 : index
      %14 = vector.load %arg3[%c0_12, %c0_13] : memref<4x512xf32, #tpu.memory_space<vmem>>, vector<1x512xf32>
      %c1 = arith.constant 1 : index
      %c0_14 = arith.constant 0 : index
      %15 = vector.load %arg3[%c1, %c0_14] : memref<4x512xf32, #tpu.memory_space<vmem>>, vector<1x512xf32>
      %c2 = arith.constant 2 : index
      %c0_15 = arith.constant 0 : index
      %16 = vector.load %arg3[%c2, %c0_15] : memref<4x512xf32, #tpu.memory_space<vmem>>, vector<1x512xf32>
      %c3 = arith.constant 3 : index
      %c0_16 = arith.constant 0 : index
      %17 = vector.load %arg3[%c3, %c0_16] : memref<4x512xf32, #tpu.memory_space<vmem>>, vector<1x1xf32>
      %cst_17 = arith.constant dense<0.000000e+00> : vector<512xf32>
      %18 = vector.multi_reduction <add>, %13, %cst_17 [0] : vector<8x512xf32> to vector<512xf32>
      %19 = vector.shape_cast %18 : vector<512xf32> to vector<1x512xf32>
      %cst_18 = arith.constant 8.000000e+00 : f32
      %20 = vector.broadcast %cst_18 : f32 to vector<1x512xf32>
      %21 = arith.divf %19, %20 : vector<1x512xf32>
      %22 = vector.broadcast %21 : vector<1x512xf32> to vector<8x512xf32>
      %23 = arith.subf %13, %22 : vector<8x512xf32>
      %24 = vector.broadcast %21 : vector<1x512xf32> to vector<8x512xf32>
      %25 = arith.subf %13, %24 : vector<8x512xf32>
      %26 = arith.mulf %23, %25 : vector<8x512xf32>
      %cst_19 = arith.constant dense<0.000000e+00> : vector<512xf32>
      %27 = vector.multi_reduction <add>, %26, %cst_19 [0] : vector<8x512xf32> to vector<512xf32>
      %28 = vector.shape_cast %27 : vector<512xf32> to vector<1x512xf32>
      %cst_20 = arith.constant 8.000000e+00 : f32
      %29 = vector.broadcast %cst_20 : f32 to vector<1x512xf32>
      %30 = arith.divf %28, %29 : vector<1x512xf32>
      %cst_21 = arith.constant 9.99999974E-6 : f32
      %31 = vector.broadcast %cst_21 : f32 to vector<1x512xf32>
      %32 = arith.addf %30, %31 : vector<1x512xf32>
      %33 = math.rsqrt %32 : vector<1x512xf32>
      %34 = arith.mulf %14, %33 : vector<1x512xf32>
      %35 = arith.mulf %21, %34 : vector<1x512xf32>
      %36 = arith.subf %15, %35 : vector<1x512xf32>
      %37 = vector.broadcast %34 : vector<1x512xf32> to vector<8x512xf32>
      %38 = arith.mulf %13, %37 : vector<8x512xf32>
      %39 = vector.broadcast %36 : vector<1x512xf32> to vector<8x512xf32>
      %40 = arith.addf %38, %39 : vector<8x512xf32>
      %cst_22 = arith.constant 5.000000e-01 : f32
      %41 = vector.broadcast %cst_22 : f32 to vector<8x512xf32>
      %42 = arith.mulf %41, %40 : vector<8x512xf32>
      %43 = math.tanh %42 : vector<8x512xf32>
      %cst_23 = arith.constant 5.000000e-01 : f32
      %44 = vector.broadcast %cst_23 : f32 to vector<8x512xf32>
      %45 = arith.mulf %44, %43 : vector<8x512xf32>
      %cst_24 = arith.constant 5.000000e-01 : f32
      %46 = vector.broadcast %cst_24 : f32 to vector<8x512xf32>
      %47 = arith.addf %45, %46 : vector<8x512xf32>
      %48 = vector.broadcast %16 : vector<1x512xf32> to vector<8x512xf32>
      %49 = arith.mulf %47, %48 : vector<8x512xf32>
      %cst_25 = arith.constant dense<0.000000e+00> : vector<8xf32>
      %50 = vector.multi_reduction <add>, %49, %cst_25 [1] : vector<8x512xf32> to vector<8xf32>
      %51 = vector.shape_cast %50 : vector<8xf32> to vector<8x1xf32>
      %52 = vector.broadcast %17 : vector<1x1xf32> to vector<8x1xf32>
      %53 = arith.addf %51, %52 : vector<8x1xf32>
      %cst_26 = arith.constant 5.000000e-01 : f32
      %54 = vector.broadcast %cst_26 : f32 to vector<8x1xf32>
      %55 = arith.mulf %54, %53 : vector<8x1xf32>
      %56 = math.tanh %55 : vector<8x1xf32>
      %cst_27 = arith.constant 5.000000e-01 : f32
      %57 = vector.broadcast %cst_27 : f32 to vector<8x1xf32>
      %58 = arith.mulf %57, %56 : vector<8x1xf32>
      %cst_28 = arith.constant 5.000000e-01 : f32
      %59 = vector.broadcast %cst_28 : f32 to vector<8x1xf32>
      %60 = arith.addf %58, %59 : vector<8x1xf32>
      %cst_29 = arith.constant 1.000000e+00 : f32
      %61 = vector.broadcast %cst_29 : f32 to vector<8x1xf32>
      %62 = arith.subf %61, %60 : vector<8x1xf32>
      %c0_30 = arith.constant 0 : index
      %c0_31 = arith.constant 0 : index
      %63 = vector.load %arg4[%c0_30, %c0_31] : memref<8x2xf32, #tpu.memory_space<vmem>>, vector<8x1xf32>
      tpu.vector_store %arg4[%c0_30, %c0_31], %62 {strides = array<i32>} : memref<8x2xf32, #tpu.memory_space<vmem>>, vector<8x1xf32>,
      %c0_32 = arith.constant 0 : index
      %c1_33 = arith.constant 1 : index
      %64 = vector.load %arg4[%c0_32, %c1_33] : memref<8x2xf32, #tpu.memory_space<vmem>>, vector<8x1xf32>
      tpu.vector_store %arg4[%c0_32, %c1_33], %60 {strides = array<i32>} : memref<8x2xf32, #tpu.memory_space<vmem>>, vector<8x1xf32>,
    } else {
    }
    return
  }
  func.func @transform_0(%arg0: i32) -> (i32, i32) {
    %c0_i32 = arith.constant 0 : i32
    %c0_i32_0 = arith.constant 0 : i32
    return %c0_i32, %arg0 : i32, i32
  }
  func.func @transform_1(%arg0: i32) -> (i32, i32) {
    %c0_i32 = arith.constant 0 : i32
    %c0_i32_0 = arith.constant 0 : i32
    return %arg0, %c0_i32 : i32, i32
  }
  func.func @transform_2(%arg0: i32) -> (i32, i32) {
    %c0_i32 = arith.constant 0 : i32
    %c0_i32_0 = arith.constant 0 : i32
    %c0_i32_1 = arith.constant 0 : i32
    return %c0_i32, %c0_i32_0 : i32, i32
  }
  func.func @transform_3(%arg0: i32) -> (i32, i32) {
    %c0_i32 = arith.constant 0 : i32
    %c0_i32_0 = arith.constant 0 : i32
    %c0_i32_1 = arith.constant 0 : i32
    return %c0_i32, %c0_i32_0 : i32, i32
  }
}

</mosaic_0001>

<bundles_post_ra>
// kernel: discriminator_forward.1
= control target key start
LH: loop header
LB: loop body
LE: loop exit
PB: predicated region body
PF: predicated region fallthrough
CT: control target
= control target key end

     0   :  { %vm2137_vm12 = vcmask 1040384   ;;  %vm2139_vm13 = vcmask 1042434   ;;  %vm2141_vm15 = vcmask 1041408   ;;  %s3546_s6 = smov 1   ;;  %s5252_s1 = inlined_call_operand.vmem [shape: bf16[1024,512], index: 1, kind: input, shape index: {}]   ;;  %s5253_s0 = inlined_call_operand.vmem [shape: f32[8,1024], index: 0, kind: input, shape index: {}]   ;;  %s5254_s2 = inlined_call_operand.vmem [shape: f32[4,512], index: 2, kind: input, shape index: {}]   ;;  %s5255_s3 = inlined_call_operand.vmem [shape: f32[8,2], index: 3, kind: output, shape index: {}]  }
   0x1   :  { %v2354_v0 = vld [vmem:[%s5252_s1 + $0xe0] sm:$0xf]  ;;  %v3296_v1 = vld [vmem:[%s5252_s1 + $0xec] sm:$0xf0] }
   0x2   :  { %v2482_v2 = vld [vmem:[%s5252_s1 + $0x1e0] sm:$0xf]  ;;  %v2355_v3 = vor.u32 %v3296_v1, %v2354_v0  ;;  %v3328_v4 = vld [vmem:[%s5252_s1 + $0x1ec] sm:$0xf0] }
   0x3   :  { %v2610_v5 = vld [vmem:[%s5252_s1 + $0x2e0] sm:$0xf]  ;;  %v3360_v6 = vld [vmem:[%s5252_s1 + $0x2ec] sm:$0xf0]  ;;  %v2483_v7 = vor.u32 %v3328_v4, %v2482_v2 }
   0x4   :  { %v2611_v8 = vor.u32 %v3360_v6, %v2610_v5  ;;  %v2738_v9 = vld [vmem:[%s5252_s1 + $0x3e0] sm:$0xf]  ;;  %v3392_v10 = vld [vmem:[%s5252_s1 + $0x3ec] sm:$0xf0]  ;;  %1578 = vmatpush.bf16.msra.mxu0 %v2355_v3 }
   0x5   :  { %v2338_v11 = vld [vmem:[%s5252_s1 + $0xc0] sm:$0xf]  ;;  %v2739_v12 = vor.u32 %v3392_v10, %v2738_v9  ;;  %v3292_v13 = vld [vmem:[%s5252_s1 + $0xcc] sm:$0xf0]  ;;  %1591 = vmatpush.bf16.msra.mxu1 %v2483_v7 }
   0x6   :  { %v2466_v14 = vld [vmem:[%s5252_s1 + $0x1c0] sm:$0xf]  ;;  %v3324_v15 = vld [vmem:[%s5252_s1 + $0x1cc] sm:$0xf0]  ;;  %1604 = vmatpush.bf16.msra.mxu2 %v2611_v8  ;;  %v2339_v16 = vor.u32 %v3292_v13, %v2338_v11 }
   0x7   :  { %v2467_v17 = vor.u32 %v3324_v15, %v2466_v14  ;;  %v2594_v18 = vld [vmem:[%s5252_s1 + $0x2c0] sm:$0xf]  ;;  %v3356_v19 = vld [vmem:[%s5252_s1 + $0x2cc] sm:$0xf0]  ;;  %1617 = vmatpush.bf16.msra.mxu3 %v2739_v12 }
   0x8   :  { %v2722_v20 = vld [vmem:[%s5252_s1 + $0x3c0] sm:$0xf]  ;;  %v2595_v21 = vor.u32 %v3356_v19, %v2594_v18  ;;  %v3388_v22 = vld [vmem:[%s5252_s1 + $0x3cc] sm:$0xf0]  ;;  %1579 = vmatpush.bf16.msra.mxu0 %v2339_v16 }
   0x9   :  { %v2322_v23 = vld [vmem:[%s5252_s1 + $0xa0] sm:$0xf]  ;;  %v3288_v24 = vld [vmem:[%s5252_s1 + $0xac] sm:$0xf0]  ;;  %v2723_v25 = vor.u32 %v3388_v22, %v2722_v20  ;;  %1592 = vmatpush.bf16.msra.mxu1 %v2467_v17 }
   0xa   :  { %v2450_v26 = vld [vmem:[%s5252_s1 + $0x1a0] sm:$0xf]  ;;  %v3320_v27 = vld [vmem:[%s5252_s1 + $0x1ac] sm:$0xf0]  ;;  %v2323_v29 = vor.u32 %v3288_v24, %v2322_v23  ;;  %1605 = vmatpush.bf16.msra.mxu2 %v2595_v21 }
   0xb   :  { %v2578_v28 = vld [vmem:[%s5252_s1 + $0x2a0] sm:$0xf]  ;;  %v3352_v30 = vld [vmem:[%s5252_s1 + $0x2ac] sm:$0xf0]  ;;  %v2451_v33 = vor.u32 %v3320_v27, %v2450_v26  ;;  %1618 = vmatpush.bf16.msra.mxu3 %v2723_v25 }
   0xc   :  { %v2706_v31 = vld [vmem:[%s5252_s1 + $0x3a0] sm:$0xf]  ;;  %v3384_v32 = vld [vmem:[%s5252_s1 + $0x3ac] sm:$0xf0]  ;;  %v2579_v34 = vor.u32 %v3352_v30, %v2578_v28  ;;  %1580 = vmatpush.bf16.msra.mxu0 %v2323_v29 }
   0xd   :  { %v2306_v35 = vld [vmem:[%s5252_s1 + $0x80] sm:$0xf]  ;;  %v3284_v36 = vld [vmem:[%s5252_s1 + $0x8c] sm:$0xf0]  ;;  %v2707_v38 = vor.u32 %v3384_v32, %v2706_v31  ;;  %1593 = vmatpush.bf16.msra.mxu1 %v2451_v33 }
   0xe   :  { %v2434_v37 = vld [vmem:[%s5252_s1 + $0x180] sm:$0xf]  ;;  %v3316_v39 = vld [vmem:[%s5252_s1 + $0x18c] sm:$0xf0]  ;;  %v2307_v44 = vor.u32 %v3284_v36, %v2306_v35  ;;  %1606 = vmatpush.bf16.msra.mxu2 %v2579_v34 }
   0xf   :  { %v2562_v40 = vld [vmem:[%s5252_s1 + $0x280] sm:$0xf]  ;;  %v3348_v41 = vld [vmem:[%s5252_s1 + $0x28c] sm:$0xf0]  ;;  %v2435_v45 = vor.u32 %v3316_v39, %v2434_v37  ;;  %1619 = vmatpush.bf16.msra.mxu3 %v2707_v38 }
  0x10   :  { %v2690_v42 = vld [vmem:[%s5252_s1 + $0x380] sm:$0xf]  ;;  %v3380_v43 = vld [vmem:[%s5252_s1 + $0x38c] sm:$0xf0]  ;;  %v2563_v46 = vor.u32 %v3348_v41, %v2562_v40  ;;  %1581 = vmatpush.bf16.msra.mxu0 %v2307_v44 }
  0x11   :  { %v2290_v47 = vld [vmem:[%s5252_s1 + $0x60] sm:$0xf]  ;;  %v3280_v48 = vld [vmem:[%s5252_s1 + $0x6c] sm:$0xf0]  ;;  %v2691_v50 = vor.u32 %v3380_v43, %v2690_v42  ;;  %1594 = vmatpush.bf16.msra.mxu1 %v2435_v45 }
  0x12   :  { %v2418_v49 = vld [vmem:[%s5252_s1 + $0x160] sm:$0xf]  ;;  %v3312_v51 = vld [vmem:[%s5252_s1 + $0x16c] sm:$0xf0]  ;;  %v2291_v56 = vor.u32 %v3280_v48, %v2290_v47  ;;  %1607 = vmatpush.bf16.msra.mxu2 %v2563_v46 }
  0x13   :  { %v2546_v52 = vld [vmem:[%s5252_s1 + $0x260] sm:$0xf]  ;;  %v3344_v53 = vld [vmem:[%s5252_s1 + $0x26c] sm:$0xf0]  ;;  %v2419_v57 = vor.u32 %v3312_v51, %v2418_v49  ;;  %1620 = vmatpush.bf16.msra.mxu3 %v2691_v50 }
  0x14   :  { %v2674_v54 = vld [vmem:[%s5252_s1 + $0x360] sm:$0xf]  ;;  %v3376_v55 = vld [vmem:[%s5252_s1 + $0x36c] sm:$0xf0]  ;;  %v2547_v58 = vor.u32 %v3344_v53, %v2546_v52  ;;  %1582 = vmatpush.bf16.msra.mxu0 %v2291_v56 }
  0x15   :  { %v2274_v59 = vld [vmem:[%s5252_s1 + $0x40] sm:$0xf]  ;;  %v3276_v60 = vld [vmem:[%s5252_s1 + $0x4c] sm:$0xf0]  ;;  %v2675_v62 = vor.u32 %v3376_v55, %v2674_v54  ;;  %1595 = vmatpush.bf16.msra.mxu1 %v2419_v57 }
  0x16   :  { %v2402_v61 = vld [vmem:[%s5252_s1 + $0x140] sm:$0xf]  ;;  %v3308_v63 = vld [vmem:[%s5252_s1 + $0x14c] sm:$0xf0]  ;;  %v2275_v4 = vor.u32 %v3276_v60, %v2274_v59  ;;  %1608 = vmatpush.bf16.msra.mxu2 %v2547_v58 }
  0x17   :  { %v2530_v0 = vld [vmem:[%s5252_s1 + $0x240] sm:$0xf]  ;;  %v3340_v1 = vld [vmem:[%s5252_s1 + $0x24c] sm:$0xf0]  ;;  %v2403_v5 = vor.u32 %v3308_v63, %v2402_v61  ;;  %1621 = vmatpush.bf16.msra.mxu3 %v2675_v62 }
  0x18   :  { %v2658_v2 = vld [vmem:[%s5252_s1 + $0x340] sm:$0xf]  ;;  %v3372_v3 = vld [vmem:[%s5252_s1 + $0x34c] sm:$0xf0]  ;;  %v2531_v6 = vor.u32 %v3340_v1, %v2530_v0  ;;  %1583 = vmatpush.bf16.msra.mxu0 %v2275_v4  ;;  %v29_v1 = vld [vmem:[%s5253_s0 + $0x18] sm:$0xff] }
  0x19   :  { %v2258_v7 = vld [vmem:[%s5252_s1 + $0x20] sm:$0xf]  ;;  %v3272_v8 = vld [vmem:[%s5252_s1 + $0x2c] sm:$0xf0]  ;;  %v2659_v10 = vor.u32 %v3372_v3, %v2658_v2  ;;  %1596 = vmatpush.bf16.msra.mxu1 %v2403_v5  ;;  %v27_v2 = vld [vmem:[%s5253_s0 + $0x8] sm:$0xff] }
  0x1a   :  { %v2386_v9 = vld [vmem:[%s5252_s1 + $0x120] sm:$0xf]  ;;  %v3304_v11 = vld [vmem:[%s5252_s1 + $0x12c] sm:$0xf0]  ;;  %v2259_v16 = vor.u32 %v3272_v8, %v2258_v7  ;;  %1609 = vmatpush.bf16.msra.mxu2 %v2531_v6  ;;  %v3848_v6 = vpack.c.bf16 %v29_v1, %v29_v1  ;;  %v3850_v7 = vpack.c.bf16 %v27_v2, %v27_v2 }
  0x1b   :  { %v2514_v12 = vld [vmem:[%s5252_s1 + $0x220] sm:$0xf]  ;;  %v3336_v13 = vld [vmem:[%s5252_s1 + $0x22c] sm:$0xf0]  ;;  %v2387_v19 = vor.u32 %v3304_v11, %v2386_v9  ;;  %1622 = vmatpush.bf16.msra.mxu3 %v2659_v10 }
  0x1c   :  { %v2642_v14 = vld [vmem:[%s5252_s1 + $0x320] sm:$0xf]  ;;  %v3368_v15 = vld [vmem:[%s5252_s1 + $0x32c] sm:$0xf0]  ;;  %v2515_v20 = vor.u32 %v3336_v13, %v2514_v12  ;;  %1584 = vmatpush.bf16.msra.mxu0 %v2259_v16 }
  0x1d   :  { %v2242_v17 = vld [vmem:[%s5252_s1] sm:$0xf]  ;;  %v3268_v18 = vld [vmem:[%s5252_s1 + $0xc] sm:$0xf0]  ;;  %v2643_v24 = vor.u32 %v3368_v15, %v2642_v14  ;;  %1597 = vmatpush.bf16.msra.mxu1 %v2387_v19 }
  0x1e   :  { %v2370_v21 = vld [vmem:[%s5252_s1 + $0x100] sm:$0xf]  ;;  %v3300_v22 = vld [vmem:[%s5252_s1 + $0x10c] sm:$0xf0]  ;;  %v2243_v31 = vor.u32 %v3268_v18, %v2242_v17  ;;  %1610 = vmatpush.bf16.msra.mxu2 %v2515_v20 }
  0x1f   :  { %v2498_v23 = vld [vmem:[%s5252_s1 + $0x200] sm:$0xf]  ;;  %v3332_v25 = vld [vmem:[%s5252_s1 + $0x20c] sm:$0xf0]  ;;  %v2371_v35 = vor.u32 %v3300_v22, %v2370_v21  ;;  %1623 = vmatpush.bf16.msra.mxu3 %v2643_v24 }
  0x20   :  { %v2626_v26 = vld [vmem:[%s5252_s1 + $0x300] sm:$0xf]  ;;  %v3364_v27 = vld [vmem:[%s5252_s1 + $0x30c] sm:$0xf0]  ;;  %v2499_v36 = vor.u32 %v3332_v25, %v2498_v23  ;;  %1585 = vmatpush.bf16.msra.mxu0 %v2243_v31 }
  0x21   :  { %v2866_v28 = vld [vmem:[%s5252_s1 + $0x4e0] sm:$0xf]  ;;  %v3424_v29 = vld [vmem:[%s5252_s1 + $0x4ec] sm:$0xf0]  ;;  %v2627_v39 = vor.u32 %v3364_v27, %v2626_v26  ;;  %1598 = vmatpush.bf16.msra.mxu1 %v2371_v35 }
  0x22   :  { %v2994_v30 = vld [vmem:[%s5252_s1 + $0x5e0] sm:$0xf]  ;;  %v3456_v32 = vld [vmem:[%s5252_s1 + $0x5ec] sm:$0xf0]  ;;  %v2867_v40 = vor.u32 %v3424_v29, %v2866_v28  ;;  %1611 = vmatpush.bf16.msra.mxu2 %v2499_v36 }
  0x23   :  { %v3122_v33 = vld [vmem:[%s5252_s1 + $0x6e0] sm:$0xf]  ;;  %v3488_v34 = vld [vmem:[%s5252_s1 + $0x6ec] sm:$0xf0]  ;;  %v2995_v41 = vor.u32 %v3456_v32, %v2994_v30  ;;  %1624 = vmatpush.bf16.msra.mxu3 %v2627_v39 }
  0x24   :  { %v3250_v37 = vld [vmem:[%s5252_s1 + $0x7e0] sm:$0xf]  ;;  %v3520_v38 = vld [vmem:[%s5252_s1 + $0x7ec] sm:$0xf0]  ;;  %v3123_v42 = vor.u32 %v3488_v34, %v3122_v33  ;;  %1630 = vmatpush.bf16.msrb.mxu0 %v2867_v40  ;;  %1599 = vmatmul.bf16.vlgmr.msra.gmra.mxu1 %v3850_v7 }
  0x25   :  { %v2850_v43 = vld [vmem:[%s5252_s1 + $0x4c0] sm:$0xf]  ;;  %v3420_v44 = vld [vmem:[%s5252_s1 + $0x4cc] sm:$0xf0]  ;;  %v3251_v46 = vor.u32 %v3520_v38, %v3250_v37  ;;  %1643 = vmatpush.bf16.msrb.mxu1 %v2995_v41 }
  0x26   :  { %v2978_v45 = vld [vmem:[%s5252_s1 + $0x5c0] sm:$0xf]  ;;  %v3452_v47 = vld [vmem:[%s5252_s1 + $0x5cc] sm:$0xf0]  ;;  %v2851_v53 = vor.u32 %v3420_v44, %v2850_v43  ;;  %1656 = vmatpush.bf16.msrb.mxu2 %v3123_v42  ;;  %1625 = vmatmul.bf16.vlgmr.msra.gmra.mxu3 %v3848_v6 }
  0x27   :  { %v3106_v48 = vld [vmem:[%s5252_s1 + $0x6c0] sm:$0xf]  ;;  %v3484_v49 = vld [vmem:[%s5252_s1 + $0x6cc] sm:$0xf0]  ;;  %v2979_v58 = vor.u32 %v3452_v47, %v2978_v45  ;;  %1669 = vmatpush.bf16.msrb.mxu3 %v3251_v46 }
  0x28   :  { %v3234_v50 = vld [vmem:[%s5252_s1 + $0x7c0] sm:$0xf]  ;;  %v3516_v51 = vld [vmem:[%s5252_s1 + $0x7cc] sm:$0xf0]  ;;  %v3107_v59 = vor.u32 %v3484_v49, %v3106_v48  ;;  %1631 = vmatpush.bf16.msrb.mxu0 %v2851_v53 }
  0x29   :  { %v28_v52 = vld [vmem:[%s5253_s0 + $0x10] sm:$0xff]  ;;  %v2834_v54 = vld [vmem:[%s5252_s1 + $0x4a0] sm:$0xf]  ;;  %v3235_v63 = vor.u32 %v3516_v51, %v3234_v50  ;;  %1644 = vmatpush.bf16.msrb.mxu1 %v2979_v58 }
  0x2a   :  { %v3416_v55 = vld [vmem:[%s5252_s1 + $0x4ac] sm:$0xf0]  ;;  %v2962_v56 = vld [vmem:[%s5252_s1 + $0x5a0] sm:$0xf]  ;;  %v3819_v57 = vpack.c.bf16 %v28_v52, %v28_v52  ;;  %1657 = vmatpush.bf16.msrb.mxu2 %v3107_v59 }
  0x2b   :  { %v3448_v60 = vld [vmem:[%s5252_s1 + $0x5ac] sm:$0xf0]  ;;  %v3090_v61 = vld [vmem:[%s5252_s1 + $0x6a0] sm:$0xf]  ;;  %v2835_v8 = vor.u32 %v3416_v55, %v2834_v54  ;;  %1670 = vmatpush.bf16.msrb.mxu3 %v3235_v63 }
  0x2c   :  { %v3480_v62 = vld [vmem:[%s5252_s1 + $0x6ac] sm:$0xf0]  ;;  %1612 = vmatmul.bf16.vlgmr.msra.gmra.mxu2 %v3819_v57  ;;  %v26_v0 = vld [vmem:[%s5253_s0] sm:$0xff]  ;;  %v2963_v9 = vor.u32 %v3448_v60, %v2962_v56 }
  0x2d   :  { %v3218_v3 = vld [vmem:[%s5252_s1 + $0x7a0] sm:$0xf]  ;;  %v3512_v4 = vld [vmem:[%s5252_s1 + $0x7ac] sm:$0xf0]  ;;  %v3846_v5 = vpack.c.bf16 %v26_v0, %v26_v0  ;;  %v3091_v10 = vor.u32 %v3480_v62, %v3090_v61  ;;  %1632 = vmatpush.bf16.msrb.mxu0 %v2835_v8  ;;  %v3294_v8 = vld [vmem:[%s5252_s1 + $0xe4] sm:$0xf] }
  0x2e   :  { %v2818_v11 = vld [vmem:[%s5252_s1 + $0x480] sm:$0xf]  ;;  %v3412_v12 = vld [vmem:[%s5252_s1 + $0x48c] sm:$0xf0]  ;;  %v3219_v14 = vor.u32 %v3512_v4, %v3218_v3  ;;  %1645 = vmatpush.bf16.msrb.mxu1 %v2963_v9  ;;  %v2356_v9 = vld [vmem:[%s5252_s1 + $0xf0] sm:$0xf0] }
  0x2f   :  { %v2946_v13 = vld [vmem:[%s5252_s1 + $0x580] sm:$0xf]  ;;  %v3444_v15 = vld [vmem:[%s5252_s1 + $0x58c] sm:$0xf0]  ;;  %1586 = vmatmul.bf16.vlgmr.msra.gmra.mxu0 %v3846_v5  ;;  %v2819_v20 = vor.u32 %v3412_v12, %v2818_v11  ;;  %1658 = vmatpush.bf16.msrb.mxu2 %v3091_v10  ;;  %v3326_v10 = vld [vmem:[%s5252_s1 + $0x1e4] sm:$0xf] }
  0x30   :  { %v3074_v16 = vld [vmem:[%s5252_s1 + $0x680] sm:$0xf]  ;;  %v3476_v17 = vld [vmem:[%s5252_s1 + $0x68c] sm:$0xf0]  ;;  %v2947_v21 = vor.u32 %v3444_v15, %v2946_v13  ;;  %1671 = vmatpush.bf16.msrb.mxu3 %v3219_v14  ;;  %v2484_v12 = vld [vmem:[%s5252_s1 + $0x1f0] sm:$0xf0] }
  0x31   :  { %v3202_v18 = vld [vmem:[%s5252_s1 + $0x780] sm:$0xf]  ;;  %v3508_v19 = vld [vmem:[%s5252_s1 + $0x78c] sm:$0xf0]  ;;  %v3075_v22 = vor.u32 %v3476_v17, %v3074_v16  ;;  %1633 = vmatpush.bf16.msrb.mxu0 %v2819_v20  ;;  %v3358_v13 = vld [vmem:[%s5252_s1 + $0x2e4] sm:$0xf] }
  0x32   :  { %v2802_v23 = vld [vmem:[%s5252_s1 + $0x460] sm:$0xf]  ;;  %v3408_v24 = vld [vmem:[%s5252_s1 + $0x46c] sm:$0xf0]  ;;  %v3203_v26 = vor.u32 %v3508_v19, %v3202_v18  ;;  %1646 = vmatpush.bf16.msrb.mxu1 %v2947_v21  ;;  %v2612_v14 = vld [vmem:[%s5252_s1 + $0x2f0] sm:$0xf0]  ;;  %v2359_v21 = vor.u32 %v3294_v8, %v2356_v9 }
  0x33   :  { %v2930_v25 = vld [vmem:[%s5252_s1 + $0x560] sm:$0xf]  ;;  %v3440_v27 = vld [vmem:[%s5252_s1 + $0x56c] sm:$0xf0]  ;;  %v2803_v32 = vor.u32 %v3408_v24, %v2802_v23  ;;  %1659 = vmatpush.bf16.msrb.mxu2 %v3075_v22  ;;  %v3390_v17 = vld [vmem:[%s5252_s1 + $0x3e4] sm:$0xf] }
  0x34   :  { %v3058_v28 = vld [vmem:[%s5252_s1 + $0x660] sm:$0xf]  ;;  %v3472_v29 = vld [vmem:[%s5252_s1 + $0x66c] sm:$0xf0]  ;;  %v2931_v33 = vor.u32 %v3440_v27, %v2930_v25  ;;  %1672 = vmatpush.bf16.msrb.mxu3 %v3203_v26  ;;  %v2740_v18 = vld [vmem:[%s5252_s1 + $0x3f0] sm:$0xf0]  ;;  %v2487_v25 = vor.u32 %v3326_v10, %v2484_v12  ;;  %v2615_v26 = vor.u32 %v3358_v13, %v2612_v14 }
  0x35   :  { %v3186_v30 = vld [vmem:[%s5252_s1 + $0x760] sm:$0xf]  ;;  %v3504_v31 = vld [vmem:[%s5252_s1 + $0x76c] sm:$0xf0]  ;;  %v3059_v34 = vor.u32 %v3472_v29, %v3058_v28  ;;  %1634 = vmatpush.bf16.msrb.mxu0 %v2803_v32  ;;  %v33_v23 = vld [vmem:[%s5253_s0 + $0x38] sm:$0xff] }
  0x36   :  { %v2786_v35 = vld [vmem:[%s5252_s1 + $0x440] sm:$0xf]  ;;  %v3404_v36 = vld [vmem:[%s5252_s1 + $0x44c] sm:$0xf0]  ;;  %v3187_v38 = vor.u32 %v3504_v31, %v3186_v30  ;;  %1647 = vmatpush.bf16.msrb.mxu1 %v2931_v33  ;;  %v3290_v24 = vld [vmem:[%s5252_s1 + $0xc4] sm:$0xf]  ;;  %v2743_v30 = vor.u32 %v3390_v17, %v2740_v18 }
  0x37   :  { %v2914_v37 = vld [vmem:[%s5252_s1 + $0x540] sm:$0xf]  ;;  %v3436_v39 = vld [vmem:[%s5252_s1 + $0x54c] sm:$0xf0]  ;;  %v2787_v44 = vor.u32 %v3404_v36, %v2786_v35  ;;  %1660 = vmatpush.bf16.msrb.mxu2 %v3059_v34  ;;  %v2340_v27 = vld [vmem:[%s5252_s1 + $0xd0] sm:$0xf0]  ;;  %v4033_v36 = vpack.c.bf16 %v33_v23, %v33_v23 }
  0x38   :  { %v3042_v40 = vld [vmem:[%s5252_s1 + $0x640] sm:$0xf]  ;;  %v3468_v41 = vld [vmem:[%s5252_s1 + $0x64c] sm:$0xf0]  ;;  %v2915_v45 = vor.u32 %v3436_v39, %v2914_v37  ;;  %1673 = vmatpush.bf16.msrb.mxu3 %v3187_v38  ;;  %v3322_v28 = vld [vmem:[%s5252_s1 + $0x1c4] sm:$0xf]  ;;  %v2343_v39 = vor.u32 %v3290_v24, %v2340_v27 }
  0x39   :  { %v3170_v42 = vld [vmem:[%s5252_s1 + $0x740] sm:$0xf]  ;;  %v3500_v43 = vld [vmem:[%s5252_s1 + $0x74c] sm:$0xf0]  ;;  %v3043_v46 = vor.u32 %v3468_v41, %v3042_v40  ;;  %1635 = vmatpush.bf16.msrb.mxu0 %v2787_v44  ;;  %v31_v29 = vld [vmem:[%s5253_s0 + $0x28] sm:$0xff] }
  0x3a   :  { %v2770_v47 = vld [vmem:[%s5252_s1 + $0x420] sm:$0xf]  ;;  %v3400_v48 = vld [vmem:[%s5252_s1 + $0x42c] sm:$0xf0]  ;;  %v3171_v50 = vor.u32 %v3500_v43, %v3170_v42  ;;  %1648 = vmatpush.bf16.msrb.mxu1 %v2915_v45  ;;  %v2468_v32 = vld [vmem:[%s5252_s1 + $0x1d0] sm:$0xf0]  ;;  %v4041_v40 = vpack.c.bf16 %v31_v29, %v31_v29 }
  0x3b   :  { %v2898_v49 = vld [vmem:[%s5252_s1 + $0x520] sm:$0xf]  ;;  %v3432_v51 = vld [vmem:[%s5252_s1 + $0x52c] sm:$0xf0]  ;;  %v2771_v56 = vor.u32 %v3400_v48, %v2770_v47  ;;  %1661 = vmatpush.bf16.msrb.mxu2 %v3043_v46  ;;  %v3354_v33 = vld [vmem:[%s5252_s1 + $0x2c4] sm:$0xf]  ;;  %v2471_v41 = vor.u32 %v3322_v28, %v2468_v32 }
  0x3c   :  { %v3026_v52 = vld [vmem:[%s5252_s1 + $0x620] sm:$0xf]  ;;  %v3464_v53 = vld [vmem:[%s5252_s1 + $0x62c] sm:$0xf0]  ;;  %v2899_v60 = vor.u32 %v3432_v51, %v2898_v49  ;;  %1674 = vmatpush.bf16.msrb.mxu3 %v3171_v50  ;;  %v2596_v34 = vld [vmem:[%s5252_s1 + $0x2d0] sm:$0xf0] }
  0x3d   :  { %v3154_v54 = vld [vmem:[%s5252_s1 + $0x720] sm:$0xf]  ;;  %v3496_v55 = vld [vmem:[%s5252_s1 + $0x72c] sm:$0xf0]  ;;  %v3027_v61 = vor.u32 %v3464_v53, %v3026_v52  ;;  %1636 = vmatpush.bf16.msrb.mxu0 %v2771_v56  ;;  %v3386_v37 = vld [vmem:[%s5252_s1 + $0x3c4] sm:$0xf]  ;;  %v2599_v42 = vor.u32 %v3354_v33, %v2596_v34 }
  0x3e   :  { %v2754_v58 = vld [vmem:[%s5252_s1 + $0x400] sm:$0xf]  ;;  %v3396_v59 = vld [vmem:[%s5252_s1 + $0x40c] sm:$0xf0]  ;;  %v3155_v1 = vor.u32 %v3496_v55, %v3154_v54  ;;  %1649 = vmatpush.bf16.msrb.mxu1 %v2899_v60  ;;  %v2724_v38 = vld [vmem:[%s5252_s1 + $0x3d0] sm:$0xf0] }
  0x3f   :  { %v2882_v62 = vld [vmem:[%s5252_s1 + $0x500] sm:$0xf]  ;;  %v3428_v63 = vld [vmem:[%s5252_s1 + $0x50c] sm:$0xf0]  ;;  %v2755_v11 = vor.u32 %v3396_v59, %v2754_v58  ;;  %1662 = vmatpush.bf16.msrb.mxu2 %v3027_v61  ;;  %v3286_v43 = vld [vmem:[%s5252_s1 + $0xa4] sm:$0xf]  ;;  %v2727_v46 = vor.u32 %v3386_v37, %v2724_v38 }
  0x40   :  { %v3010_v0 = vld [vmem:[%s5252_s1 + $0x600] sm:$0xf]  ;;  %v3460_v2 = vld [vmem:[%s5252_s1 + $0x60c] sm:$0xf0]  ;;  %v2883_v15 = vor.u32 %v3428_v63, %v2882_v62  ;;  %1675 = vmatpush.bf16.msrb.mxu3 %v3155_v1  ;;  %v2324_v44 = vld [vmem:[%s5252_s1 + $0xb0] sm:$0xf0] }
  0x41   :  { %v3138_v3 = vld [vmem:[%s5252_s1 + $0x700] sm:$0xf]  ;;  %v3492_v4 = vld [vmem:[%s5252_s1 + $0x70c] sm:$0xf0]  ;;  %v3011_v16 = vor.u32 %v3460_v2, %v3010_v0  ;;  %1637 = vmatpush.bf16.msrb.mxu0 %v2755_v11  ;;  %v3318_v45 = vld [vmem:[%s5252_s1 + $0x1a4] sm:$0xf]  ;;  %v2327_v52 = vor.u32 %v3286_v43, %v2324_v44 }
  0x42   :  { %v32_v19 = vld [vmem:[%s5253_s0 + $0x30] sm:$0xff]  ;;  %v3139_v20 = vor.u32 %v3492_v4, %v3138_v3  ;;  %v30_v22 = vld [vmem:[%s5253_s0 + $0x20] sm:$0xff]  ;;  %1650 = vmatpush.bf16.msrb.mxu1 %v2883_v15 }
  0x43   :  { %v4020_v31 = vpack.c.bf16 %v32_v19, %v32_v19  ;;  %1663 = vmatpush.bf16.msrb.mxu2 %v3011_v16  ;;  %v4031_v35 = vpack.c.bf16 %v30_v22, %v30_v22  ;;  %v2452_v47 = vld [vmem:[%s5252_s1 + $0x1b0] sm:$0xf0]  ;;  %v3350_v48 = vld [vmem:[%s5252_s1 + $0x2a4] sm:$0xf] }
  0x44   :  { %1676 = vmatpush.bf16.msrb.mxu3 %v3139_v20  ;;  %v2580_v49 = vld [vmem:[%s5252_s1 + $0x2b0] sm:$0xf0]  ;;  %v3382_v50 = vld [vmem:[%s5252_s1 + $0x3a4] sm:$0xf]  ;;  %v2455_v53 = vor.u32 %v3318_v45, %v2452_v47 }
  0x45   :  { %1682 = vmatpush.bf16.msra.mxu0 %v2359_v21  ;;  %v2708_v51 = vld [vmem:[%s5252_s1 + $0x3b0] sm:$0xf0]  ;;  %1651 = vmatmul.bf16.vlgmr.msrb.gmra.mxu1 %v4041_v40  ;;  %v2583_v54 = vor.u32 %v3350_v48, %v2580_v49  ;;  %v3282_v55 = vld [vmem:[%s5252_s1 + $0x84] sm:$0xf] }
  0x46   :  { %1695 = vmatpush.bf16.msra.mxu1 %v2487_v25  ;;  %1664 = vmatmul.bf16.vlgmr.msrb.gmra.mxu2 %v4020_v31  ;;  %v2308_v56 = vld [vmem:[%s5252_s1 + $0x90] sm:$0xf0]  ;;  %v3314_v58 = vld [vmem:[%s5252_s1 + $0x184] sm:$0xf]  ;;  %v2711_v59 = vor.u32 %v3382_v50, %v2708_v51 }
  0x47   :  { %1708 = vmatpush.bf16.msra.mxu2 %v2615_v26  ;;  %1638 = vmatmul.bf16.vlgmr.msrb.gmra.mxu0 %v4031_v35  ;;  %v2436_v60 = vld [vmem:[%s5252_s1 + $0x190] sm:$0xf0]  ;;  %v3346_v61 = vld [vmem:[%s5252_s1 + $0x284] sm:$0xf]  ;;  %v2311_v1 = vor.u32 %v3282_v55, %v2308_v56 }
  0x48   :  { %1721 = vmatpush.bf16.msra.mxu3 %v2743_v30  ;;  %v2564_v62 = vld [vmem:[%s5252_s1 + $0x290] sm:$0xf0]  ;;  %v3378_v63 = vld [vmem:[%s5252_s1 + $0x384] sm:$0xf]  ;;  %v2439_v2 = vor.u32 %v3314_v58, %v2436_v60 }
  0x49   :  { %1677 = vmatmul.bf16.vlgmr.msrb.gmra.mxu3 %v4033_v36  ;;  %1683 = vmatpush.bf16.msra.mxu0 %v2343_v39  ;;  %v2692_v0 = vld [vmem:[%s5252_s1 + $0x390] sm:$0xf0]  ;;  %v2567_v3 = vor.u32 %v3346_v61, %v2564_v62  ;;  %v3278_v4 = vld [vmem:[%s5252_s1 + $0x64] sm:$0xf] }
  0x4a   :  { %1696 = vmatpush.bf16.msra.mxu1 %v2471_v41  ;;  %v2292_v8 = vld [vmem:[%s5252_s1 + $0x70] sm:$0xf0]  ;;  %v3310_v9 = vld [vmem:[%s5252_s1 + $0x164] sm:$0xf]  ;;  %v2695_v10 = vor.u32 %v3378_v63, %v2692_v0 }
  0x4b   :  { %1709 = vmatpush.bf16.msra.mxu2 %v2599_v42  ;;  %v2420_v11 = vld [vmem:[%s5252_s1 + $0x170] sm:$0xf0]  ;;  %v3342_v12 = vld [vmem:[%s5252_s1 + $0x264] sm:$0xf]  ;;  %v2295_v16 = vor.u32 %v3278_v4, %v2292_v8 }
  0x4c   :  { %1722 = vmatpush.bf16.msra.mxu3 %v2727_v46  ;;  %v2548_v13 = vld [vmem:[%s5252_s1 + $0x270] sm:$0xf0]  ;;  %v3374_v14 = vld [vmem:[%s5252_s1 + $0x364] sm:$0xf]  ;;  %v2423_v17 = vor.u32 %v3310_v9, %v2420_v11 }
  0x4d   :  { %1684 = vmatpush.bf16.msra.mxu0 %v2327_v52  ;;  %v2676_v15 = vld [vmem:[%s5252_s1 + $0x370] sm:$0xf0]  ;;  %v2551_v18 = vor.u32 %v3342_v12, %v2548_v13  ;;  %v3274_v19 = vld [vmem:[%s5252_s1 + $0x44] sm:$0xf] }
  0x4e   :  { %1697 = vmatpush.bf16.msra.mxu1 %v2455_v53  ;;  %v2276_v20 = vld [vmem:[%s5252_s1 + $0x50] sm:$0xf0]  ;;  %v3306_v21 = vld [vmem:[%s5252_s1 + $0x144] sm:$0xf]  ;;  %v2679_v22 = vor.u32 %v3374_v14, %v2676_v15 }
  0x4f   :  { %1710 = vmatpush.bf16.msra.mxu2 %v2583_v54  ;;  %v2404_v23 = vld [vmem:[%s5252_s1 + $0x150] sm:$0xf0]  ;;  %v3338_v24 = vld [vmem:[%s5252_s1 + $0x244] sm:$0xf]  ;;  %v2279_v28 = vor.u32 %v3274_v19, %v2276_v20 }
  0x50   :  { %1723 = vmatpush.bf16.msra.mxu3 %v2711_v59  ;;  %v2532_v25 = vld [vmem:[%s5252_s1 + $0x250] sm:$0xf0]  ;;  %v3370_v26 = vld [vmem:[%s5252_s1 + $0x344] sm:$0xf]  ;;  %v2407_v29 = vor.u32 %v3306_v21, %v2404_v23 }
  0x51   :  { %1685 = vmatpush.bf16.msra.mxu0 %v2311_v1  ;;  %v2660_v27 = vld [vmem:[%s5252_s1 + $0x350] sm:$0xf0]  ;;  %v2535_v30 = vor.u32 %v3338_v24, %v2532_v25  ;;  %v3270_v32 = vld [vmem:[%s5252_s1 + $0x24] sm:$0xf] }
  0x52   :  { %1698 = vmatpush.bf16.msra.mxu1 %v2439_v2  ;;  %v2260_v33 = vld [vmem:[%s5252_s1 + $0x30] sm:$0xf0]  ;;  %v3302_v34 = vld [vmem:[%s5252_s1 + $0x124] sm:$0xf]  ;;  %v2663_v37 = vor.u32 %v3370_v26, %v2660_v27 }
  0x53   :  { %1711 = vmatpush.bf16.msra.mxu2 %v2567_v3  ;;  %v2388_v38 = vld [vmem:[%s5252_s1 + $0x130] sm:$0xf0]  ;;  %v3334_v39 = vld [vmem:[%s5252_s1 + $0x224] sm:$0xf]  ;;  %v2263_v44 = vor.u32 %v3270_v32, %v2260_v33 }
  0x54   :  { %1724 = vmatpush.bf16.msra.mxu3 %v2695_v10  ;;  %v2516_v41 = vld [vmem:[%s5252_s1 + $0x230] sm:$0xf0]  ;;  %v3366_v42 = vld [vmem:[%s5252_s1 + $0x324] sm:$0xf]  ;;  %v2391_v47 = vor.u32 %v3302_v34, %v2388_v38 }
  0x55   :  { %1686 = vmatpush.bf16.msra.mxu0 %v2295_v16  ;;  %v2644_v43 = vld [vmem:[%s5252_s1 + $0x330] sm:$0xf0]  ;;  %v3266_v45 = vld [vmem:[%s5252_s1 + $0x4] sm:$0xf]  ;;  %v2519_v48 = vor.u32 %v3334_v39, %v2516_v41 }
  0x56   :  { %1699 = vmatpush.bf16.msra.mxu1 %v2423_v17  ;;  %v2244_v46 = vld [vmem:[%s5252_s1 + $0x10] sm:$0xf0]  ;;  %v3298_v49 = vld [vmem:[%s5252_s1 + $0x104] sm:$0xf]  ;;  %v2647_v52 = vor.u32 %v3366_v42, %v2644_v43 }
  0x57   :  { %1712 = vmatpush.bf16.msra.mxu2 %v2551_v18  ;;  %v2372_v50 = vld [vmem:[%s5252_s1 + $0x110] sm:$0xf0]  ;;  %v3330_v51 = vld [vmem:[%s5252_s1 + $0x204] sm:$0xf]  ;;  %v2247_v60 = vor.u32 %v3266_v45, %v2244_v46 }
  0x58   :  { %1725 = vmatpush.bf16.msra.mxu3 %v2679_v22  ;;  %v2500_v53 = vld [vmem:[%s5252_s1 + $0x210] sm:$0xf0]  ;;  %v3362_v54 = vld [vmem:[%s5252_s1 + $0x304] sm:$0xf]  ;;  %v2375_v0 = vor.u32 %v3298_v49, %v2372_v50 }
  0x59   :  { %1687 = vmatpush.bf16.msra.mxu0 %v2279_v28  ;;  %v2628_v55 = vld [vmem:[%s5252_s1 + $0x310] sm:$0xf0]  ;;  %v3422_v56 = vld [vmem:[%s5252_s1 + $0x4e4] sm:$0xf]  ;;  %v2503_v1 = vor.u32 %v3330_v51, %v2500_v53 }
  0x5a   :  { %1700 = vmatpush.bf16.msra.mxu1 %v2407_v29  ;;  %v2868_v58 = vld [vmem:[%s5252_s1 + $0x4f0] sm:$0xf0]  ;;  %v3454_v59 = vld [vmem:[%s5252_s1 + $0x5e4] sm:$0xf]  ;;  %v2631_v4 = vor.u32 %v3362_v54, %v2628_v55 }
  0x5b   :  { %1713 = vmatpush.bf16.msra.mxu2 %v2535_v30  ;;  %v2996_v61 = vld [vmem:[%s5252_s1 + $0x5f0] sm:$0xf0]  ;;  %v3486_v62 = vld [vmem:[%s5252_s1 + $0x6e4] sm:$0xf]  ;;  %v2871_v8 = vor.u32 %v3422_v56, %v2868_v58 }
  0x5c   :  { %1726 = vmatpush.bf16.msra.mxu3 %v2663_v37  ;;  %v3124_v63 = vld [vmem:[%s5252_s1 + $0x6f0] sm:$0xf0]  ;;  %v3518_v2 = vld [vmem:[%s5252_s1 + $0x7e4] sm:$0xf]  ;;  %v2999_v9 = vor.u32 %v3454_v59, %v2996_v61 }
  0x5d   :  { %1688 = vmatpush.bf16.msra.mxu0 %v2263_v44  ;;  %v3252_v3 = vld [vmem:[%s5252_s1 + $0x7f0] sm:$0xf0]  ;;  %v3127_v10 = vor.u32 %v3486_v62, %v3124_v63  ;;  %v3418_v11 = vld [vmem:[%s5252_s1 + $0x4c4] sm:$0xf] }
  0x5e   :  { %1701 = vmatpush.bf16.msra.mxu1 %v2391_v47  ;;  %v2852_v12 = vld [vmem:[%s5252_s1 + $0x4d0] sm:$0xf0]  ;;  %v3450_v13 = vld [vmem:[%s5252_s1 + $0x5c4] sm:$0xf]  ;;  %v3255_v14 = vor.u32 %v3518_v2, %v3252_v3 }
  0x5f   :  { %1714 = vmatpush.bf16.msra.mxu2 %v2519_v48  ;;  %v2980_v15 = vld [vmem:[%s5252_s1 + $0x5d0] sm:$0xf0]  ;;  %v3482_v16 = vld [vmem:[%s5252_s1 + $0x6c4] sm:$0xf]  ;;  %v2855_v20 = vor.u32 %v3418_v11, %v2852_v12 }
  0x60   :  { %1727 = vmatpush.bf16.msra.mxu3 %v2647_v52  ;;  %v3108_v17 = vld [vmem:[%s5252_s1 + $0x6d0] sm:$0xf0]  ;;  %v3514_v18 = vld [vmem:[%s5252_s1 + $0x7c4] sm:$0xf]  ;;  %v2983_v21 = vor.u32 %v3450_v13, %v2980_v15 }
  0x61   :  { %1689 = vmatpush.bf16.msra.mxu0 %v2247_v60  ;;  %v3236_v19 = vld [vmem:[%s5252_s1 + $0x7d0] sm:$0xf0]  ;;  %v3111_v22 = vor.u32 %v3482_v16, %v3108_v17  ;;  %v3414_v23 = vld [vmem:[%s5252_s1 + $0x4a4] sm:$0xf] }
  0x62   :  { %1702 = vmatpush.bf16.msra.mxu1 %v2375_v0  ;;  %v2836_v24 = vld [vmem:[%s5252_s1 + $0x4b0] sm:$0xf0]  ;;  %v3446_v25 = vld [vmem:[%s5252_s1 + $0x5a4] sm:$0xf]  ;;  %v3239_v26 = vor.u32 %v3514_v18, %v3236_v19 }
  0x63   :  { %1715 = vmatpush.bf16.msra.mxu2 %v2503_v1  ;;  %v2964_v27 = vld [vmem:[%s5252_s1 + $0x5b0] sm:$0xf0]  ;;  %v3478_v28 = vld [vmem:[%s5252_s1 + $0x6a4] sm:$0xf]  ;;  %v2839_v33 = vor.u32 %v3414_v23, %v2836_v24 }
  0x64   :  { %1728 = vmatpush.bf16.msra.mxu3 %v2631_v4  ;;  %v3092_v29 = vld [vmem:[%s5252_s1 + $0x6b0] sm:$0xf0]  ;;  %v3510_v30 = vld [vmem:[%s5252_s1 + $0x7a4] sm:$0xf]  ;;  %1690 = vmatmul.bf16.vlgmr.msra.gmra.mxu0 %v3846_v5  ;;  %v2967_v34 = vor.u32 %v3446_v25, %v2964_v27 }
  0x65   :  { %1734 = vmatpush.bf16.msrb.mxu0 %v2871_v8  ;;  %v3220_v32 = vld [vmem:[%s5252_s1 + $0x7b0] sm:$0xf0]  ;;  %1703 = vmatmul.bf16.vlgmr.msra.gmra.mxu1 %v3850_v7  ;;  %v3095_v37 = vor.u32 %v3478_v28, %v3092_v29  ;;  %v3410_v38 = vld [vmem:[%s5252_s1 + $0x484] sm:$0xf] }
  0x66   :  { %1747 = vmatpush.bf16.msrb.mxu1 %v2999_v9  ;;  %1716 = vmatmul.bf16.vlgmr.msra.gmra.mxu2 %v3819_v57  ;;  %v2820_v39 = vld [vmem:[%s5252_s1 + $0x490] sm:$0xf0]  ;;  %v3442_v41 = vld [vmem:[%s5252_s1 + $0x584] sm:$0xf]  ;;  %v3223_v42 = vor.u32 %v3510_v30, %v3220_v32 }
  0x67   :  { %1760 = vmatpush.bf16.msrb.mxu2 %v3127_v10  ;;  %1729 = vmatmul.bf16.vlgmr.msra.gmra.mxu3 %v3848_v6  ;;  %v2948_v43 = vld [vmem:[%s5252_s1 + $0x590] sm:$0xf0]  ;;  %v3474_v44 = vld [vmem:[%s5252_s1 + $0x684] sm:$0xf]  ;;  %v2823_v48 = vor.u32 %v3410_v38, %v2820_v39  ;;  %v2362_v39 = vld [vmem:[%s5252_s1 + $0xe8] sm:$0xf] }
  0x68   :  { %1773 = vmatpush.bf16.msrb.mxu3 %v3255_v14  ;;  %v3076_v45 = vld [vmem:[%s5252_s1 + $0x690] sm:$0xf0]  ;;  %v3506_v46 = vld [vmem:[%s5252_s1 + $0x784] sm:$0xf]  ;;  %v2951_v49 = vor.u32 %v3442_v41, %v2948_v43  ;;  %v3297_v41 = vld [vmem:[%s5252_s1 + $0xf4] sm:$0xf0] }
  0x69   :  { %1735 = vmatpush.bf16.msrb.mxu0 %v2855_v20  ;;  %v3204_v47 = vld [vmem:[%s5252_s1 + $0x790] sm:$0xf0]  ;;  %v3079_v50 = vor.u32 %v3474_v44, %v3076_v45  ;;  %v3406_v51 = vld [vmem:[%s5252_s1 + $0x464] sm:$0xf]  ;;  %v3329_v44 = vld [vmem:[%s5252_s1 + $0x1f4] sm:$0xf0] }
  0x6a   :  { %1748 = vmatpush.bf16.msrb.mxu1 %v2983_v21  ;;  %v2804_v52 = vld [vmem:[%s5252_s1 + $0x470] sm:$0xf0]  ;;  %v3438_v53 = vld [vmem:[%s5252_s1 + $0x564] sm:$0xf]  ;;  %v3207_v54 = vor.u32 %v3506_v46, %v3204_v47  ;;  %v2618_v45 = vld [vmem:[%s5252_s1 + $0x2e8] sm:$0xf] }
  0x6b   :  { %1761 = vmatpush.bf16.msrb.mxu2 %v3111_v22  ;;  %v2932_v55 = vld [vmem:[%s5252_s1 + $0x570] sm:$0xf0]  ;;  %v3470_v56 = vld [vmem:[%s5252_s1 + $0x664] sm:$0xf]  ;;  %v2807_v61 = vor.u32 %v3406_v51, %v2804_v52  ;;  %v3361_v46 = vld [vmem:[%s5252_s1 + $0x2f4] sm:$0xf0]  ;;  %v2363_v52 = vor.u32 %v3297_v41, %v2362_v39 }
  0x6c   :  { %1774 = vmatpush.bf16.msrb.mxu3 %v3239_v26  ;;  %v3060_v58 = vld [vmem:[%s5252_s1 + $0x670] sm:$0xf0]  ;;  %v3502_v59 = vld [vmem:[%s5252_s1 + $0x764] sm:$0xf]  ;;  %v2935_v62 = vor.u32 %v3438_v53, %v2932_v55  ;;  %v2346_v55 = vld [vmem:[%s5252_s1 + $0xc8] sm:$0xf] }
  0x6d   :  { %1736 = vmatpush.bf16.msrb.mxu0 %v2839_v33  ;;  %v3188_v60 = vld [vmem:[%s5252_s1 + $0x770] sm:$0xf0]  ;;  %v3063_v63 = vor.u32 %v3470_v56, %v3060_v58  ;;  %v3402_v0 = vld [vmem:[%s5252_s1 + $0x444] sm:$0xf]  ;;  %v3293_v56 = vld [vmem:[%s5252_s1 + $0xd4] sm:$0xf0] }
  0x6e   :  { %1749 = vmatpush.bf16.msrb.mxu1 %v2967_v34  ;;  %v2788_v1 = vld [vmem:[%s5252_s1 + $0x450] sm:$0xf0]  ;;  %v3434_v2 = vld [vmem:[%s5252_s1 + $0x544] sm:$0xf]  ;;  %v3191_v3 = vor.u32 %v3502_v59, %v3188_v60  ;;  %v2474_v58 = vld [vmem:[%s5252_s1 + $0x1c8] sm:$0xf] }
  0x6f   :  { %1762 = vmatpush.bf16.msrb.mxu2 %v3095_v37  ;;  %v2916_v4 = vld [vmem:[%s5252_s1 + $0x550] sm:$0xf0]  ;;  %v3466_v8 = vld [vmem:[%s5252_s1 + $0x644] sm:$0xf]  ;;  %v2791_v12 = vor.u32 %v3402_v0, %v2788_v1  ;;  %v3325_v60 = vld [vmem:[%s5252_s1 + $0x1d4] sm:$0xf0]  ;;  %v2347_v1 = vor.u32 %v3293_v56, %v2346_v55 }
  0x70   :  { %1775 = vmatpush.bf16.msrb.mxu3 %v3223_v42  ;;  %v3044_v9 = vld [vmem:[%s5252_s1 + $0x650] sm:$0xf0]  ;;  %v3498_v10 = vld [vmem:[%s5252_s1 + $0x744] sm:$0xf]  ;;  %v2919_v13 = vor.u32 %v3434_v2, %v2916_v4  ;;  %v2490_v42 = vld [vmem:[%s5252_s1 + $0x1e8] sm:$0xf]  ;;  %v2475_v2 = vor.u32 %v3325_v60, %v2474_v58 }
  0x71   :  { %1737 = vmatpush.bf16.msrb.mxu0 %v2823_v48  ;;  %v3172_v11 = vld [vmem:[%s5252_s1 + $0x750] sm:$0xf0]  ;;  %v3047_v14 = vor.u32 %v3466_v8, %v3044_v9  ;;  %v3398_v15 = vld [vmem:[%s5252_s1 + $0x424] sm:$0xf]  ;;  %v2491_v53 = vor.u32 %v3329_v44, %v2490_v42  ;;  %v3389_v0 = vld [vmem:[%s5252_s1 + $0x3d4] sm:$0xf0] }
  0x72   :  { %1750 = vmatpush.bf16.msrb.mxu1 %v2951_v49  ;;  %v2772_v16 = vld [vmem:[%s5252_s1 + $0x430] sm:$0xf0]  ;;  %v3430_v17 = vld [vmem:[%s5252_s1 + $0x524] sm:$0xf]  ;;  %v3175_v18 = vor.u32 %v3498_v10, %v3172_v11  ;;  %v2746_v49 = vld [vmem:[%s5252_s1 + $0x3e8] sm:$0xf] }
  0x73   :  { %1763 = vmatpush.bf16.msrb.mxu2 %v3079_v50  ;;  %v2900_v19 = vld [vmem:[%s5252_s1 + $0x530] sm:$0xf0]  ;;  %v3462_v20 = vld [vmem:[%s5252_s1 + $0x624] sm:$0xf]  ;;  %v2775_v24 = vor.u32 %v3398_v15, %v2772_v16  ;;  %v3393_v50 = vld [vmem:[%s5252_s1 + $0x3f4] sm:$0xf0] }
  0x74   :  { %1776 = vmatpush.bf16.msrb.mxu3 %v3207_v54  ;;  %v3028_v21 = vld [vmem:[%s5252_s1 + $0x630] sm:$0xf0]  ;;  %v3494_v22 = vld [vmem:[%s5252_s1 + $0x724] sm:$0xf]  ;;  %v2903_v27 = vor.u32 %v3430_v17, %v2900_v19  ;;  %v2619_v54 = vor.u32 %v3361_v46, %v2618_v45  ;;  %v2747_v59 = vor.u32 %v3393_v50, %v2746_v49  ;;  %v2330_v4 = vld [vmem:[%s5252_s1 + $0xa8] sm:$0xf] }
  0x75   :  { %1738 = vmatpush.bf16.msrb.mxu0 %v2807_v61  ;;  %v3156_v23 = vld [vmem:[%s5252_s1 + $0x730] sm:$0xf0]  ;;  %v3394_v25 = vld [vmem:[%s5252_s1 + $0x404] sm:$0xf]  ;;  %v3031_v28 = vor.u32 %v3462_v20, %v3028_v21  ;;  %v2602_v61 = vld [vmem:[%s5252_s1 + $0x2c8] sm:$0xf] }
  0x76   :  { %1751 = vmatpush.bf16.msrb.mxu1 %v2935_v62  ;;  %v2756_v26 = vld [vmem:[%s5252_s1 + $0x410] sm:$0xf0]  ;;  %v3426_v29 = vld [vmem:[%s5252_s1 + $0x504] sm:$0xf]  ;;  %v3159_v33 = vor.u32 %v3494_v22, %v3156_v23  ;;  %v3357_v62 = vld [vmem:[%s5252_s1 + $0x2d4] sm:$0xf0] }
  0x77   :  { %1764 = vmatpush.bf16.msrb.mxu2 %v3063_v63  ;;  %v2884_v30 = vld [vmem:[%s5252_s1 + $0x510] sm:$0xf0]  ;;  %v3458_v32 = vld [vmem:[%s5252_s1 + $0x604] sm:$0xf]  ;;  %v2759_v43 = vor.u32 %v3394_v25, %v2756_v26  ;;  %v2730_v63 = vld [vmem:[%s5252_s1 + $0x3c8] sm:$0xf] }
  0x78   :  { %1777 = vmatpush.bf16.msrb.mxu3 %v3191_v3  ;;  %v3012_v34 = vld [vmem:[%s5252_s1 + $0x610] sm:$0xf0]  ;;  %v3490_v37 = vld [vmem:[%s5252_s1 + $0x704] sm:$0xf]  ;;  %v2887_v47 = vor.u32 %v3426_v29, %v2884_v30  ;;  %v2603_v3 = vor.u32 %v3357_v62, %v2602_v61  ;;  %v3289_v8 = vld [vmem:[%s5252_s1 + $0xb4] sm:$0xf0]  ;;  %v2731_v10 = vor.u32 %v3389_v0, %v2730_v63 }
  0x79   :  { %1739 = vmatpush.bf16.msrb.mxu0 %v2791_v12  ;;  %v3140_v38 = vld [vmem:[%s5252_s1 + $0x710] sm:$0xf0]  ;;  %v3015_v48 = vor.u32 %v3458_v32, %v3012_v34  ;;  %v2458_v9 = vld [vmem:[%s5252_s1 + $0x1a8] sm:$0xf]  ;;  %v3321_v11 = vld [vmem:[%s5252_s1 + $0x1b4] sm:$0xf0]  ;;  %v2331_v16 = vor.u32 %v3289_v8, %v2330_v4 }
  0x7a   :  { %1752 = vmatpush.bf16.msrb.mxu1 %v2919_v13  ;;  %v3143_v51 = vor.u32 %v3490_v37, %v3140_v38  ;;  %v2586_v12 = vld [vmem:[%s5252_s1 + $0x2a8] sm:$0xf]  ;;  %v3353_v13 = vld [vmem:[%s5252_s1 + $0x2b4] sm:$0xf0]  ;;  %v2459_v17 = vor.u32 %v3321_v11, %v2458_v9 }
  0x7b   :  { %1765 = vmatpush.bf16.msrb.mxu2 %v3047_v14  ;;  %v2714_v14 = vld [vmem:[%s5252_s1 + $0x3a8] sm:$0xf]  ;;  %v3385_v15 = vld [vmem:[%s5252_s1 + $0x3b4] sm:$0xf0] }
  0x7c   :  { %1778 = vmatpush.bf16.msrb.mxu3 %v3175_v18  ;;  %v2587_v18 = vor.u32 %v3353_v13, %v2586_v12  ;;  %v2314_v19 = vld [vmem:[%s5252_s1 + $0x88] sm:$0xf]  ;;  %v3285_v20 = vld [vmem:[%s5252_s1 + $0x94] sm:$0xf0]  ;;  %v2715_v22 = vor.u32 %v3385_v15, %v2714_v14 }
  0x7d   :  { %1740 = vmatpush.bf16.msrb.mxu0 %v2775_v24  ;;  %v2442_v21 = vld [vmem:[%s5252_s1 + $0x188] sm:$0xf]  ;;  %v3317_v23 = vld [vmem:[%s5252_s1 + $0x194] sm:$0xf0] }
  0x7e   :  { %1753 = vmatpush.bf16.msrb.mxu1 %v2903_v27  ;;  %v2570_v24 = vld [vmem:[%s5252_s1 + $0x288] sm:$0xf]  ;;  %v3349_v25 = vld [vmem:[%s5252_s1 + $0x294] sm:$0xf0]  ;;  %v2443_v29 = vor.u32 %v3317_v23, %v2442_v21 }
  0x7f   :  { %1766 = vmatpush.bf16.msrb.mxu2 %v3031_v28  ;;  %v2698_v26 = vld [vmem:[%s5252_s1 + $0x388] sm:$0xf]  ;;  %v3381_v27 = vld [vmem:[%s5252_s1 + $0x394] sm:$0xf0]  ;;  %v2315_v28 = vor.u32 %v3285_v20, %v2314_v19  ;;  %v2571_v30 = vor.u32 %v3349_v25, %v2570_v24 }
  0x80   :  { %1779 = vmatpush.bf16.msrb.mxu3 %v3159_v33  ;;  %v2298_v32 = vld [vmem:[%s5252_s1 + $0x68] sm:$0xf]  ;;  %v3281_v33 = vld [vmem:[%s5252_s1 + $0x74] sm:$0xf0]  ;;  %v2699_v37 = vor.u32 %v3381_v27, %v2698_v26 }
  0x81   :  { %1741 = vmatpush.bf16.msrb.mxu0 %v2759_v43  ;;  %v2426_v34 = vld [vmem:[%s5252_s1 + $0x168] sm:$0xf]  ;;  %v3313_v38 = vld [vmem:[%s5252_s1 + $0x174] sm:$0xf0]  ;;  %v2299_v44 = vor.u32 %v3281_v33, %v2298_v32 }
  0x82   :  { %1754 = vmatpush.bf16.msrb.mxu1 %v2887_v47  ;;  %v2554_v39 = vld [vmem:[%s5252_s1 + $0x268] sm:$0xf]  ;;  %v3345_v41 = vld [vmem:[%s5252_s1 + $0x274] sm:$0xf0]  ;;  %v2427_v45 = vor.u32 %v3313_v38, %v2426_v34 }
  0x83   :  { %1767 = vmatpush.bf16.msrb.mxu2 %v3015_v48  ;;  %v2682_v42 = vld [vmem:[%s5252_s1 + $0x368] sm:$0xf]  ;;  %v3377_v43 = vld [vmem:[%s5252_s1 + $0x374] sm:$0xf0]  ;;  %v2555_v46 = vor.u32 %v3345_v41, %v2554_v39 }
  0x84   :  { %1780 = vmatpush.bf16.msrb.mxu3 %v3143_v51  ;;  %1742 = vmatmul.bf16.vlgmr.msrb.gmra.mxu0 %v4031_v35  ;;  %v2282_v47 = vld [vmem:[%s5252_s1 + $0x48] sm:$0xf]  ;;  %v3277_v48 = vld [vmem:[%s5252_s1 + $0x54] sm:$0xf0]  ;;  %v2683_v50 = vor.u32 %v3377_v43, %v2682_v42 }
  0x85   :  { %1786 = vmatpush.bf16.msra.mxu0 %v2363_v52  ;;  %1755 = vmatmul.bf16.vlgmr.msrb.gmra.mxu1 %v4041_v40  ;;  %v2410_v49 = vld [vmem:[%s5252_s1 + $0x148] sm:$0xf]  ;;  %v3309_v51 = vld [vmem:[%s5252_s1 + $0x154] sm:$0xf0]  ;;  %v2283_v56 = vor.u32 %v3277_v48, %v2282_v47 }
  0x86   :  { %1799 = vmatpush.bf16.msra.mxu1 %v2491_v53  ;;  %1768 = vmatmul.bf16.vlgmr.msrb.gmra.mxu2 %v4020_v31  ;;  %v2538_v52 = vld [vmem:[%s5252_s1 + $0x248] sm:$0xf]  ;;  %v3341_v53 = vld [vmem:[%s5252_s1 + $0x254] sm:$0xf0]  ;;  %v2411_v58 = vor.u32 %v3309_v51, %v2410_v49 }
  0x87   :  { %1812 = vmatpush.bf16.msra.mxu2 %v2619_v54  ;;  %1781 = vmatmul.bf16.vlgmr.msrb.gmra.mxu3 %v4033_v36  ;;  %v2666_v54 = vld [vmem:[%s5252_s1 + $0x348] sm:$0xf]  ;;  %v3373_v55 = vld [vmem:[%s5252_s1 + $0x354] sm:$0xf0] }
  0x88   :  { %1825 = vmatpush.bf16.msra.mxu3 %v2747_v59  ;;  %v2539_v59 = vor.u32 %v3341_v53, %v2538_v52  ;;  %v2266_v60 = vld [vmem:[%s5252_s1 + $0x28] sm:$0xf]  ;;  %v3273_v61 = vld [vmem:[%s5252_s1 + $0x34] sm:$0xf0]  ;;  %v2667_v63 = vor.u32 %v3373_v55, %v2666_v54 }
  0x89   :  { %1787 = vmatpush.bf16.msra.mxu0 %v2347_v1  ;;  %v2394_v62 = vld [vmem:[%s5252_s1 + $0x128] sm:$0xf]  ;;  %v3305_v0 = vld [vmem:[%s5252_s1 + $0x134] sm:$0xf0]  ;;  %v2267_v8 = vor.u32 %v3273_v61, %v2266_v60 }
  0x8a   :  { %1800 = vmatpush.bf16.msra.mxu1 %v2475_v2  ;;  %v2522_v1 = vld [vmem:[%s5252_s1 + $0x228] sm:$0xf]  ;;  %v3337_v2 = vld [vmem:[%s5252_s1 + $0x234] sm:$0xf0]  ;;  %v2395_v11 = vor.u32 %v3305_v0, %v2394_v62 }
  0x8b   :  { %1813 = vmatpush.bf16.msra.mxu2 %v2603_v3  ;;  %v2650_v3 = vld [vmem:[%s5252_s1 + $0x328] sm:$0xf]  ;;  %v3369_v4 = vld [vmem:[%s5252_s1 + $0x334] sm:$0xf0]  ;;  %v2523_v12 = vor.u32 %v3337_v2, %v2522_v1 }
  0x8c   :  { %1826 = vmatpush.bf16.msra.mxu3 %v2731_v10  ;;  %v2250_v9 = vld [vmem:[%s5252_s1 + $0x8] sm:$0xf]  ;;  %v3269_v10 = vld [vmem:[%s5252_s1 + $0x14] sm:$0xf0] }
  0x8d   :  { %1788 = vmatpush.bf16.msra.mxu0 %v2331_v16  ;;  %v2378_v13 = vld [vmem:[%s5252_s1 + $0x108] sm:$0xf]  ;;  %v3301_v14 = vld [vmem:[%s5252_s1 + $0x114] sm:$0xf0]  ;;  %v2651_v16 = vor.u32 %v3369_v4, %v2650_v3  ;;  %v2251_v23 = vor.u32 %v3269_v10, %v2250_v9 }
  0x8e   :  { %1801 = vmatpush.bf16.msra.mxu1 %v2459_v17  ;;  %v2506_v15 = vld [vmem:[%s5252_s1 + $0x208] sm:$0xf]  ;;  %v3333_v17 = vld [vmem:[%s5252_s1 + $0x214] sm:$0xf0]  ;;  %v2379_v27 = vor.u32 %v3301_v14, %v2378_v13 }
  0x8f   :  { %1814 = vmatpush.bf16.msra.mxu2 %v2587_v18  ;;  %v2634_v18 = vld [vmem:[%s5252_s1 + $0x308] sm:$0xf]  ;;  %v3365_v19 = vld [vmem:[%s5252_s1 + $0x314] sm:$0xf0] }
  0x90   :  { %1827 = vmatpush.bf16.msra.mxu3 %v2715_v22  ;;  %v2874_v20 = vld [vmem:[%s5252_s1 + $0x4e8] sm:$0xf]  ;;  %v3425_v21 = vld [vmem:[%s5252_s1 + $0x4f4] sm:$0xf0]  ;;  %v2635_v32 = vor.u32 %v3365_v19, %v2634_v18 }
  0x91   :  { %1789 = vmatpush.bf16.msra.mxu0 %v2315_v28  ;;  %v3002_v22 = vld [vmem:[%s5252_s1 + $0x5e8] sm:$0xf]  ;;  %v3457_v24 = vld [vmem:[%s5252_s1 + $0x5f4] sm:$0xf0]  ;;  %v2507_v28 = vor.u32 %v3333_v17, %v2506_v15  ;;  %v2875_v33 = vor.u32 %v3425_v21, %v2874_v20 }
  0x92   :  { %1802 = vmatpush.bf16.msra.mxu1 %v2443_v29  ;;  %v3130_v25 = vld [vmem:[%s5252_s1 + $0x6e8] sm:$0xf]  ;;  %v3489_v26 = vld [vmem:[%s5252_s1 + $0x6f4] sm:$0xf0]  ;;  %v3003_v34 = vor.u32 %v3457_v24, %v3002_v22 }
  0x93   :  { %1815 = vmatpush.bf16.msra.mxu2 %v2571_v30  ;;  %v3258_v29 = vld [vmem:[%s5252_s1 + $0x7e8] sm:$0xf]  ;;  %v3521_v30 = vld [vmem:[%s5252_s1 + $0x7f4] sm:$0xf0] }
  0x94   :  { %1828 = vmatpush.bf16.msra.mxu3 %v2699_v37  ;;  %v3131_v37 = vor.u32 %v3489_v26, %v3130_v25  ;;  %v2858_v38 = vld [vmem:[%s5252_s1 + $0x4c8] sm:$0xf]  ;;  %v3421_v39 = vld [vmem:[%s5252_s1 + $0x4d4] sm:$0xf0]  ;;  %v3259_v42 = vor.u32 %v3521_v30, %v3258_v29 }
  0x95   :  { %1790 = vmatpush.bf16.msra.mxu0 %v2299_v44  ;;  %v2986_v41 = vld [vmem:[%s5252_s1 + $0x5c8] sm:$0xf]  ;;  %v3453_v43 = vld [vmem:[%s5252_s1 + $0x5d4] sm:$0xf0]  ;;  %v2859_v48 = vor.u32 %v3421_v39, %v2858_v38 }
  0x96   :  { %1803 = vmatpush.bf16.msra.mxu1 %v2427_v45  ;;  %v3114_v44 = vld [vmem:[%s5252_s1 + $0x6c8] sm:$0xf]  ;;  %v3485_v45 = vld [vmem:[%s5252_s1 + $0x6d4] sm:$0xf0]  ;;  %v2987_v49 = vor.u32 %v3453_v43, %v2986_v41 }
  0x97   :  { %1816 = vmatpush.bf16.msra.mxu2 %v2555_v46  ;;  %v3242_v46 = vld [vmem:[%s5252_s1 + $0x7c8] sm:$0xf]  ;;  %v3517_v47 = vld [vmem:[%s5252_s1 + $0x7d4] sm:$0xf0] }
  0x98   :  { %1829 = vmatpush.bf16.msra.mxu3 %v2683_v50  ;;  %v3115_v50 = vor.u32 %v3485_v45, %v3114_v44  ;;  %v2842_v51 = vld [vmem:[%s5252_s1 + $0x4a8] sm:$0xf]  ;;  %v3417_v52 = vld [vmem:[%s5252_s1 + $0x4b4] sm:$0xf0]  ;;  %v3243_v54 = vor.u32 %v3517_v47, %v3242_v46 }
  0x99   :  { %1791 = vmatpush.bf16.msra.mxu0 %v2283_v56  ;;  %v2970_v53 = vld [vmem:[%s5252_s1 + $0x5a8] sm:$0xf]  ;;  %v3449_v55 = vld [vmem:[%s5252_s1 + $0x5b4] sm:$0xf0]  ;;  %v2843_v61 = vor.u32 %v3417_v52, %v2842_v51 }
  0x9a   :  { %1804 = vmatpush.bf16.msra.mxu1 %v2411_v58  ;;  %v3098_v56 = vld [vmem:[%s5252_s1 + $0x6a8] sm:$0xf]  ;;  %v3481_v58 = vld [vmem:[%s5252_s1 + $0x6b4] sm:$0xf0]  ;;  %v2971_v62 = vor.u32 %v3449_v55, %v2970_v53 }
  0x9b   :  { %1817 = vmatpush.bf16.msra.mxu2 %v2539_v59  ;;  %v3226_v59 = vld [vmem:[%s5252_s1 + $0x7a8] sm:$0xf]  ;;  %v3513_v60 = vld [vmem:[%s5252_s1 + $0x7b4] sm:$0xf0] }
  0x9c   :  { %1830 = vmatpush.bf16.msra.mxu3 %v2667_v63  ;;  %v3099_v63 = vor.u32 %v3481_v58, %v3098_v56  ;;  %v2826_v0 = vld [vmem:[%s5252_s1 + $0x488] sm:$0xf]  ;;  %v3413_v1 = vld [vmem:[%s5252_s1 + $0x494] sm:$0xf0]  ;;  %v3227_v3 = vor.u32 %v3513_v60, %v3226_v59 }
  0x9d   :  { %1792 = vmatpush.bf16.msra.mxu0 %v2267_v8  ;;  %v2954_v2 = vld [vmem:[%s5252_s1 + $0x588] sm:$0xf]  ;;  %v3445_v4 = vld [vmem:[%s5252_s1 + $0x594] sm:$0xf0] }
  0x9e   :  { %1805 = vmatpush.bf16.msra.mxu1 %v2395_v11  ;;  %v3082_v8 = vld [vmem:[%s5252_s1 + $0x688] sm:$0xf]  ;;  %v3477_v9 = vld [vmem:[%s5252_s1 + $0x694] sm:$0xf0]  ;;  %v2955_v13 = vor.u32 %v3445_v4, %v2954_v2 }
  0x9f   :  { %1818 = vmatpush.bf16.msra.mxu2 %v2523_v12  ;;  %v3210_v10 = vld [vmem:[%s5252_s1 + $0x788] sm:$0xf]  ;;  %v3509_v11 = vld [vmem:[%s5252_s1 + $0x794] sm:$0xf0]  ;;  %v2827_v12 = vor.u32 %v3413_v1, %v2826_v0  ;;  %v3083_v14 = vor.u32 %v3477_v9, %v3082_v8 }
  0xa0   :  { %1831 = vmatpush.bf16.msra.mxu3 %v2651_v16  ;;  %v2810_v15 = vld [vmem:[%s5252_s1 + $0x468] sm:$0xf]  ;;  %v3409_v16 = vld [vmem:[%s5252_s1 + $0x474] sm:$0xf0]  ;;  %v3211_v18 = vor.u32 %v3509_v11, %v3210_v10 }
  0xa1   :  { %1793 = vmatpush.bf16.msra.mxu0 %v2251_v23  ;;  %v2938_v17 = vld [vmem:[%s5252_s1 + $0x568] sm:$0xf]  ;;  %v3441_v19 = vld [vmem:[%s5252_s1 + $0x574] sm:$0xf0]  ;;  %v2811_v25 = vor.u32 %v3409_v16, %v2810_v15  ;;  %v1600_v26 = vpop.f32.mrf.mxu1  ;;  %v2364_v15 = vld [vmem:[%s5252_s1 + $0xf8] sm:$0xf0] }
  0xa2   :  { %1806 = vmatpush.bf16.msra.mxu1 %v2379_v27  ;;  %v3066_v20 = vld [vmem:[%s5252_s1 + $0x668] sm:$0xf]  ;;  %v3473_v21 = vld [vmem:[%s5252_s1 + $0x674] sm:$0xf0]  ;;  %v2939_v27 = vor.u32 %v3441_v19, %v2938_v17  ;;  %v3327_v16 = vld [vmem:[%s5252_s1 + $0x1ec] sm:$0xf] }
  0xa3   :  { %1819 = vmatpush.bf16.msra.mxu2 %v2507_v28  ;;  %v3194_v22 = vld [vmem:[%s5252_s1 + $0x768] sm:$0xf]  ;;  %v3505_v23 = vld [vmem:[%s5252_s1 + $0x774] sm:$0xf0]  ;;  %v3067_v28 = vor.u32 %v3473_v21, %v3066_v20  ;;  %v3359_v19 = vld [vmem:[%s5252_s1 + $0x2ec] sm:$0xf] }
  0xa4   :  { %1832 = vmatpush.bf16.msra.mxu3 %v2635_v32  ;;  %1794 = vmatmul.bf16.vlgmr.msra.gmra.mxu0 %v3846_v5  ;;  %v2794_v29 = vld [vmem:[%s5252_s1 + $0x448] sm:$0xf]  ;;  %v3405_v30 = vld [vmem:[%s5252_s1 + $0x454] sm:$0xf0]  ;;  %v2620_v20 = vld [vmem:[%s5252_s1 + $0x2f8] sm:$0xf0] }
  0xa5   :  { %1838 = vmatpush.bf16.msrb.mxu0 %v2875_v33  ;;  %1807 = vmatmul.bf16.vlgmr.msra.gmra.mxu1 %v3850_v7  ;;  %v2922_v32 = vld [vmem:[%s5252_s1 + $0x548] sm:$0xf]  ;;  %v3437_v38 = vld [vmem:[%s5252_s1 + $0x554] sm:$0xf0]  ;;  %v2795_v45 = vor.u32 %v3405_v30, %v2794_v29  ;;  %v2623_v29 = vor.u32 %v3359_v19, %v2620_v20  ;;  %v3291_v30 = vld [vmem:[%s5252_s1 + $0xcc] sm:$0xf] }
  0xa6   :  { %1851 = vmatpush.bf16.msrb.mxu1 %v3003_v34  ;;  %1820 = vmatmul.bf16.vlgmr.msra.gmra.mxu2 %v3819_v57  ;;  %v3050_v39 = vld [vmem:[%s5252_s1 + $0x648] sm:$0xf]  ;;  %v3469_v41 = vld [vmem:[%s5252_s1 + $0x654] sm:$0xf0]  ;;  %v2923_v46 = vor.u32 %v3437_v38, %v2922_v32  ;;  %v2348_v32 = vld [vmem:[%s5252_s1 + $0xd8] sm:$0xf0] }
  0xa7   :  { %1864 = vmatpush.bf16.msrb.mxu2 %v3131_v37  ;;  %1833 = vmatmul.bf16.vlgmr.msra.gmra.mxu3 %v3848_v6  ;;  %v3195_v37 = vor.u32 %v3505_v23, %v3194_v22  ;;  %v3501_v43 = vld [vmem:[%s5252_s1 + $0x754] sm:$0xf0]  ;;  %v3051_v47 = vor.u32 %v3469_v41, %v3050_v39  ;;  %v3034_v53 = vld [vmem:[%s5252_s1 + $0x628] sm:$0xf]  ;;  %v3391_v23 = vld [vmem:[%s5252_s1 + $0x3ec] sm:$0xf] }
  0xa8   :  { %1877 = vmatpush.bf16.msrb.mxu3 %v3259_v42  ;;  %v3178_v42 = vld [vmem:[%s5252_s1 + $0x748] sm:$0xf]  ;;  %v3433_v52 = vld [vmem:[%s5252_s1 + $0x534] sm:$0xf0]  ;;  %v3355_v38 = vld [vmem:[%s5252_s1 + $0x2cc] sm:$0xf] }
  0xa9   :  { %1839 = vmatpush.bf16.msrb.mxu0 %v2859_v48  ;;  %v2778_v48 = vld [vmem:[%s5252_s1 + $0x428] sm:$0xf]  ;;  %v3179_v51 = vor.u32 %v3501_v43, %v3178_v42  ;;  %v1626_v55 = vpop.f32.mrf.mxu3  ;;  %v3497_v58 = vld [vmem:[%s5252_s1 + $0x734] sm:$0xf0]  ;;  %v1602_v0 = vpop.f32.mrf.mxu1  ;;  %v2604_v39 = vld [vmem:[%s5252_s1 + $0x2d8] sm:$0xf0]  ;;  %v2351_v43 = vor.u32 %v3291_v30, %v2348_v32 }
  0xaa   :  { %1852 = vmatpush.bf16.msrb.mxu1 %v2987_v49  ;;  %v3401_v49 = vld [vmem:[%s5252_s1 + $0x434] sm:$0xf0]  ;;  %v3162_v56 = vld [vmem:[%s5252_s1 + $0x728] sm:$0xf]  ;;  %v3387_v41 = vld [vmem:[%s5252_s1 + $0x3cc] sm:$0xf] }
  0xab   :  { %1865 = vmatpush.bf16.msrb.mxu2 %v3115_v50  ;;  %v2906_v50 = vld [vmem:[%s5252_s1 + $0x528] sm:$0xf]  ;;  %v3429_v4 = vld [vmem:[%s5252_s1 + $0x514] sm:$0xf0]  ;;  %v3163_v10 = vor.u32 %v3497_v58, %v3162_v56  ;;  %v2732_v42 = vld [vmem:[%s5252_s1 + $0x3d8] sm:$0xf0] }
  0xac   :  { %1878 = vmatpush.bf16.msrb.mxu3 %v3243_v54  ;;  %v1587_v24 = vpop.f32.mrf.mxu0  ;;  %v3465_v54 = vld [vmem:[%s5252_s1 + $0x634] sm:$0xf0]  ;;  %v2907_v1 = vor.u32 %v3433_v52, %v2906_v50  ;;  %v3018_v8 = vld [vmem:[%s5252_s1 + $0x608] sm:$0xf]  ;;  %v2460_v50 = vld [vmem:[%s5252_s1 + $0x1b8] sm:$0xf0] }
  0xad   :  { %1840 = vmatpush.bf16.msrb.mxu0 %v2843_v61  ;;  %v1601_v33 = vadd.f32 %v1600_v26, %v1587_v24  ;;  %v2779_v61 = vor.u32 %v3401_v49, %v2778_v48  ;;  %v3035_v2 = vor.u32 %v3465_v54, %v3034_v53  ;;  %v3461_v11 = vld [vmem:[%s5252_s1 + $0x614] sm:$0xf0]  ;;  %v2748_v24 = vld [vmem:[%s5252_s1 + $0x3f8] sm:$0xf0]  ;;  %v3319_v48 = vld [vmem:[%s5252_s1 + $0x1ac] sm:$0xf]  ;;  %v2735_v49 = vor.u32 %v3387_v41, %v2732_v42 }
  0xae   :  { %1853 = vmatpush.bf16.msrb.mxu1 %v2971_v62  ;;  %v2762_v62 = vld [vmem:[%s5252_s1 + $0x408] sm:$0xf]  ;;  %v3019_v22 = vor.u32 %v3461_v11, %v3018_v8  ;;  %v2588_v52 = vld [vmem:[%s5252_s1 + $0x2b8] sm:$0xf0]  ;;  %v3383_v53 = vld [vmem:[%s5252_s1 + $0x3ac] sm:$0xf]  ;;  %v2463_v56 = vor.u32 %v3319_v48, %v2460_v50 }
  0xaf   :  { %1866 = vmatpush.bf16.msrb.mxu2 %v3099_v63  ;;  %v1613_v34 = vpop.f32.mrf.mxu2  ;;  %v3397_v63 = vld [vmem:[%s5252_s1 + $0x414] sm:$0xf0]  ;;  %v2716_v54 = vld [vmem:[%s5252_s1 + $0x3b8] sm:$0xf0] }
  0xb0   :  { %1879 = vmatpush.bf16.msrb.mxu3 %v3227_v3  ;;  %v1614_v44 = vadd.f32 %v1613_v34, %v1601_v33  ;;  %v2890_v3 = vld [vmem:[%s5252_s1 + $0x508] sm:$0xf]  ;;  %v2763_v17 = vor.u32 %v3397_v63, %v2762_v62  ;;  %v3323_v33 = vld [vmem:[%s5252_s1 + $0x1cc] sm:$0xf]  ;;  %v2751_v34 = vor.u32 %v3391_v23, %v2748_v24  ;;  %v2719_v63 = vor.u32 %v3383_v53, %v2716_v54  ;;  %v2444_v0 = vld [vmem:[%s5252_s1 + $0x198] sm:$0xf0] }
  0xb1   :  { %1841 = vmatpush.bf16.msrb.mxu0 %v2827_v12  ;;  %v3146_v12 = vld [vmem:[%s5252_s1 + $0x708] sm:$0xf]  ;;  %v2891_v21 = vor.u32 %v3429_v4, %v2890_v3  ;;  %v3315_v62 = vld [vmem:[%s5252_s1 + $0x18c] sm:$0xf]  ;;  %v2700_v4 = vld [vmem:[%s5252_s1 + $0x398] sm:$0xf0] }
  0xb2   :  { %1854 = vmatpush.bf16.msrb.mxu1 %v2955_v13  ;;  %v4755_v59 = vadd.f32 %v1626_v55, %v1614_v44  ;;  %v3493_v13 = vld [vmem:[%s5252_s1 + $0x714] sm:$0xf0]  ;;  %v3379_v3 = vld [vmem:[%s5252_s1 + $0x38c] sm:$0xf]  ;;  %v2556_v19 = vld [vmem:[%s5252_s1 + $0x278] sm:$0xf0] }
  0xb3   :  { %1867 = vmatpush.bf16.msrb.mxu2 %v3083_v14  ;;  %v3295_v14 = vld [vmem:[%s5252_s1 + $0xec] sm:$0xf]  ;;  %v2668_v41 = vld [vmem:[%s5252_s1 + $0x358] sm:$0xf0] }
  0xb4   :  { %1880 = vmatpush.bf16.msrb.mxu3 %v3211_v18  ;;  %v1589_v60 = vpop.f32.mrf.mxu0  ;;  %v2492_v18 = vld [vmem:[%s5252_s1 + $0x1f8] sm:$0xf0]  ;;  %v2367_v26 = vor.u32 %v3295_v14, %v2364_v15  ;;  %v3279_v14 = vld [vmem:[%s5252_s1 + $0x6c] sm:$0xf] }
  0xb5   :  { %1842 = vmatpush.bf16.msrb.mxu0 %v2811_v25  ;;  %v3147_v25 = vor.u32 %v3493_v13, %v3146_v12  ;;  %v3283_v60 = vld [vmem:[%s5252_s1 + $0x8c] sm:$0xf]  ;;  %v2300_v15 = vld [vmem:[%s5252_s1 + $0x78] sm:$0xf0] }
  0xb6   :  { %1855 = vmatpush.bf16.msrb.mxu1 %v2939_v27  ;;  %v1628_v27 = vpop.f32.mrf.mxu3  ;;  %v2303_v23 = vor.u32 %v3279_v14, %v2300_v15  ;;  %v2268_v48 = vld [vmem:[%s5252_s1 + $0x38] sm:$0xf0]  ;;  %v3335_v53 = vld [vmem:[%s5252_s1 + $0x22c] sm:$0xf] }
  0xb7   :  { %1868 = vmatpush.bf16.msrb.mxu2 %v3067_v28  ;;  %v1615_v9 = vpop.f32.mrf.mxu2  ;;  %v2495_v28 = vor.u32 %v3327_v16, %v2492_v18  ;;  %v3311_v16 = vld [vmem:[%s5252_s1 + $0x16c] sm:$0xf]  ;;  %v2428_v18 = vld [vmem:[%s5252_s1 + $0x178] sm:$0xf0] }
  0xb8   :  { %1881 = vmatpush.bf16.msrb.mxu3 %v3195_v37  ;;  %v2476_v37 = vld [vmem:[%s5252_s1 + $0x1d8] sm:$0xf0]  ;;  %v2431_v24 = vor.u32 %v3311_v16, %v2428_v18  ;;  %v3275_v27 = vld [vmem:[%s5252_s1 + $0x4c] sm:$0xf] }
  0xb9   :  { %1843 = vmatpush.bf16.msrb.mxu0 %v2795_v45  ;;  %v2479_v44 = vor.u32 %v3323_v33, %v2476_v37  ;;  %v2607_v45 = vor.u32 %v3355_v38, %v2604_v39  ;;  %v3339_v37 = vld [vmem:[%s5252_s1 + $0x24c] sm:$0xf]  ;;  %v2540_v38 = vld [vmem:[%s5252_s1 + $0x258] sm:$0xf0] }
  0xba   :  { %1856 = vmatpush.bf16.msrb.mxu1 %v2923_v46  ;;  %v3287_v46 = vld [vmem:[%s5252_s1 + $0xac] sm:$0xf]  ;;  %v2524_v54 = vld [vmem:[%s5252_s1 + $0x238] sm:$0xf0] }
  0xbb   :  { %1869 = vmatpush.bf16.msrb.mxu2 %v3051_v47  ;;  %v2332_v47 = vld [vmem:[%s5252_s1 + $0xb8] sm:$0xf0]  ;;  %v3371_v39 = vld [vmem:[%s5252_s1 + $0x34c] sm:$0xf] }
  0xbc   :  { %1882 = vmatpush.bf16.msrb.mxu3 %v3179_v51  ;;  %v3351_v51 = vld [vmem:[%s5252_s1 + $0x2ac] sm:$0xf]  ;;  %v2335_v55 = vor.u32 %v3287_v46, %v2332_v47  ;;  %v2543_v46 = vor.u32 %v3339_v37, %v2540_v38  ;;  %v3004_v16 = vld [vmem:[%s5252_s1 + $0x5f8] sm:$0xf0] }
  0xbd   :  { %1844 = vmatpush.bf16.msrb.mxu0 %v2779_v61  ;;  %v2591_v58 = vor.u32 %v3351_v51, %v2588_v52  ;;  %v2316_v61 = vld [vmem:[%s5252_s1 + $0x98] sm:$0xf0]  ;;  %v3271_v47 = vld [vmem:[%s5252_s1 + $0x2c] sm:$0xf]  ;;  %v2671_v51 = vor.u32 %v3371_v39, %v2668_v41 }
  0xbe   :  { %1857 = vmatpush.bf16.msrb.mxu1 %v2907_v1  ;;  %v3347_v1 = vld [vmem:[%s5252_s1 + $0x28c] sm:$0xf]  ;;  %v2319_v8 = vor.u32 %v3283_v60, %v2316_v61  ;;  %v2396_v52 = vld [vmem:[%s5252_s1 + $0x138] sm:$0xf0] }
  0xbf   :  { %1870 = vmatpush.bf16.msrb.mxu2 %v3035_v2  ;;  %v2572_v2 = vld [vmem:[%s5252_s1 + $0x298] sm:$0xf0]  ;;  %v3267_v60 = vld [vmem:[%s5252_s1 + $0xc] sm:$0xf] }
  0xc0   :  { %1883 = vmatpush.bf16.msrb.mxu3 %v3163_v10  ;;  %v2447_v10 = vor.u32 %v3315_v62, %v2444_v0  ;;  %v2575_v11 = vor.u32 %v3347_v1, %v2572_v2  ;;  %v2252_v61 = vld [vmem:[%s5252_s1 + $0x18] sm:$0xf0]  ;;  %v3299_v0 = vld [vmem:[%s5252_s1 + $0x10c] sm:$0xf] }
  0xc1   :  { %1845 = vmatpush.bf16.msrb.mxu0 %v2763_v17  ;;  %v2703_v17 = vor.u32 %v3379_v3, %v2700_v4  ;;  %v2380_v1 = vld [vmem:[%s5252_s1 + $0x118] sm:$0xf0]  ;;  %v3331_v2 = vld [vmem:[%s5252_s1 + $0x20c] sm:$0xf]  ;;  %v2255_v15 = vor.u32 %v3267_v60, %v2252_v61 }
  0xc2   :  { %1858 = vmatpush.bf16.msrb.mxu1 %v2891_v21  ;;  %v1652_v13 = vpop.f32.mrf.mxu1  ;;  %v3375_v21 = vld [vmem:[%s5252_s1 + $0x36c] sm:$0xf]  ;;  %v3132_v18 = vld [vmem:[%s5252_s1 + $0x6f8] sm:$0xf0] }
  0xc3   :  { %1871 = vmatpush.bf16.msrb.mxu2 %v3019_v22  ;;  %v2684_v22 = vld [vmem:[%s5252_s1 + $0x378] sm:$0xf0]  ;;  %v3455_v14 = vld [vmem:[%s5252_s1 + $0x5ec] sm:$0xf] }
  0xc4   :  { %1884 = vmatpush.bf16.msrb.mxu3 %v3147_v25  ;;  %1846 = vmatmul.bf16.vlgmr.msrb.gmra.mxu0 %v4031_v35  ;;  %v1639_v9 = vpop.f32.mrf.mxu0  ;;  %v2687_v30 = vor.u32 %v3375_v21, %v2684_v22  ;;  %v3260_v21 = vld [vmem:[%s5252_s1 + $0x7f8] sm:$0xf0]  ;;  %v3507_v60 = vld [vmem:[%s5252_s1 + $0x78c] sm:$0xf] }
  0xc5   :  { %1890 = vmatpush.bf16.msra.mxu0 %v2367_v26  ;;  %1859 = vmatmul.bf16.vlgmr.msrb.gmra.mxu1 %v4041_v40  ;;  %v1640_v12 = vadd.f32 %v1639_v9, %v4755_v59  ;;  %v3343_v59 = vld [vmem:[%s5252_s1 + $0x26c] sm:$0xf]  ;;  %v3244_v37 = vld [vmem:[%s5252_s1 + $0x7d8] sm:$0xf0] }
  0xc6   :  { %1903 = vmatpush.bf16.msra.mxu1 %v2495_v28  ;;  %1872 = vmatmul.bf16.vlgmr.msrb.gmra.mxu2 %v4020_v31  ;;  %v2559_v25 = vor.u32 %v3343_v59, %v2556_v19  ;;  %v2284_v28 = vld [vmem:[%s5252_s1 + $0x58] sm:$0xf0]  ;;  %v3363_v9 = vld [vmem:[%s5252_s1 + $0x30c] sm:$0xf]  ;;  %v2383_v59 = vor.u32 %v3299_v0, %v2380_v1 }
  0xc7   :  { %1916 = vmatpush.bf16.msra.mxu2 %v2623_v29  ;;  %1885 = vmatmul.bf16.vlgmr.msrb.gmra.mxu3 %v4033_v36  ;;  %v1653_v20 = vadd.f32 %v1652_v13, %v1640_v12  ;;  %v3307_v29 = vld [vmem:[%s5252_s1 + $0x14c] sm:$0xf]  ;;  %v2876_v13 = vld [vmem:[%s5252_s1 + $0x4f8] sm:$0xf0] }
  0xc8   :  { %1929 = vmatpush.bf16.msra.mxu3 %v2751_v34  ;;  %v2412_v34 = vld [vmem:[%s5252_s1 + $0x158] sm:$0xf0]  ;;  %v3423_v12 = vld [vmem:[%s5252_s1 + $0x4ec] sm:$0xf] }
  0xc9   :  { %1891 = vmatpush.bf16.msra.mxu0 %v2351_v43  ;;  %v1665_v26 = vpop.f32.mrf.mxu2  ;;  %v2287_v43 = vor.u32 %v3275_v27, %v2284_v28  ;;  %v2860_v27 = vld [vmem:[%s5252_s1 + $0x4d8] sm:$0xf0]  ;;  %v3451_v28 = vld [vmem:[%s5252_s1 + $0x5cc] sm:$0xf] }
  0xca   :  { %1904 = vmatpush.bf16.msra.mxu1 %v2479_v44  ;;  %v1666_v32 = vadd.f32 %v1665_v26, %v1653_v20  ;;  %v1654_v50 = vpop.f32.mrf.mxu1  ;;  %v3519_v20 = vld [vmem:[%s5252_s1 + $0x7ec] sm:$0xf]  ;;  %v3212_v61 = vld [vmem:[%s5252_s1 + $0x798] sm:$0xf0] }
  0xcb   :  { %1917 = vmatpush.bf16.msra.mxu2 %v2607_v45  ;;  %v2415_v45 = vor.u32 %v3307_v29, %v2412_v34  ;;  %v3419_v26 = vld [vmem:[%s5252_s1 + $0x4cc] sm:$0xf]  ;;  %v3263_v29 = vor.u32 %v3519_v20, %v3260_v21 }
  0xcc   :  { %1930 = vmatpush.bf16.msra.mxu3 %v2735_v49  ;;  %v1678_v33 = vpop.f32.mrf.mxu3  ;;  %v1641_v44 = vpop.f32.mrf.mxu0  ;;  %v3303_v49 = vld [vmem:[%s5252_s1 + $0x12c] sm:$0xf]  ;;  %v2863_v38 = vor.u32 %v3419_v26, %v2860_v27 }
  0xcd   :  { %1892 = vmatpush.bf16.msra.mxu0 %v2335_v55  ;;  %v4930_v42 = vadd.f32 %v1678_v33, %v1666_v32  ;;  %v3367_v55 = vld [vmem:[%s5252_s1 + $0x32c] sm:$0xf]  ;;  %v2399_v62 = vor.u32 %v3303_v49, %v2396_v52  ;;  %v3116_v33 = vld [vmem:[%s5252_s1 + $0x6d8] sm:$0xf0] }
  0xce   :  { %1905 = vmatpush.bf16.msra.mxu1 %v2463_v56  ;;  %v2652_v56 = vld [vmem:[%s5252_s1 + $0x338] sm:$0xf0]  ;;  %v3483_v32 = vld [vmem:[%s5252_s1 + $0x6cc] sm:$0xf] }
  0xcf   :  { %1918 = vmatpush.bf16.msra.mxu2 %v2591_v58  ;;  %v2271_v58 = vor.u32 %v3271_v47, %v2268_v48  ;;  %v2655_v4 = vor.u32 %v3367_v55, %v2652_v56  ;;  %v3515_v34 = vld [vmem:[%s5252_s1 + $0x7cc] sm:$0xf]  ;;  %v3119_v41 = vor.u32 %v3483_v32, %v3116_v33  ;;  %v2844_v44 = vld [vmem:[%s5252_s1 + $0x4b8] sm:$0xf0] }
  0xd0   :  { %1931 = vmatpush.bf16.msra.mxu3 %v2719_v63  ;;  %v2527_v63 = vor.u32 %v3335_v53, %v2524_v54  ;;  %v2972_v47 = vld [vmem:[%s5252_s1 + $0x5b8] sm:$0xf0]  ;;  %v3479_v48 = vld [vmem:[%s5252_s1 + $0x6ac] sm:$0xf] }
  0xd1   :  { %1893 = vmatpush.bf16.msra.mxu0 %v2319_v8  ;;  %v1667_v3 = vpop.f32.mrf.mxu2  ;;  %v2508_v8 = vld [vmem:[%s5252_s1 + $0x218] sm:$0xf0]  ;;  %v3511_v50 = vld [vmem:[%s5252_s1 + $0x7ac] sm:$0xf] }
  0xd2   :  { %1906 = vmatpush.bf16.msra.mxu1 %v2447_v10  ;;  %v2636_v10 = vld [vmem:[%s5252_s1 + $0x318] sm:$0xf0]  ;;  %v2511_v19 = vor.u32 %v3331_v2, %v2508_v8  ;;  %v3411_v54 = vld [vmem:[%s5252_s1 + $0x48c] sm:$0xf] }
  0xd3   :  { %1919 = vmatpush.bf16.msra.mxu2 %v2575_v11  ;;  %v2639_v22 = vor.u32 %v3363_v9, %v2636_v10  ;;  %v3100_v49 = vld [vmem:[%s5252_s1 + $0x6b8] sm:$0xf0]  ;;  %v3475_v56 = vld [vmem:[%s5252_s1 + $0x68c] sm:$0xf]  ;;  %v3215_v9 = vor.u32 %v3507_v60, %v3212_v61 }
  0xd4   :  { %1932 = vmatpush.bf16.msra.mxu3 %v2703_v17  ;;  %v1680_v11 = vpop.f32.mrf.mxu3  ;;  %v3487_v17 = vld [vmem:[%s5252_s1 + $0x6ec] sm:$0xf]  ;;  %v3103_v53 = vor.u32 %v3479_v48, %v3100_v49  ;;  %v2828_v55 = vld [vmem:[%s5252_s1 + $0x498] sm:$0xf0] }
  0xd5   :  { %1894 = vmatpush.bf16.msra.mxu0 %v2303_v23  ;;  %v2879_v23 = vor.u32 %v3423_v12, %v2876_v13  ;;  %v3407_v2 = vld [vmem:[%s5252_s1 + $0x46c] sm:$0xf]  ;;  %v2812_v3 = vld [vmem:[%s5252_s1 + $0x478] sm:$0xf0] }
  0xd6   :  { %1907 = vmatpush.bf16.msra.mxu1 %v2431_v24  ;;  %v3007_v24 = vor.u32 %v3455_v14, %v3004_v16  ;;  %v2940_v10 = vld [vmem:[%s5252_s1 + $0x578] sm:$0xf0]  ;;  %v3471_v11 = vld [vmem:[%s5252_s1 + $0x66c] sm:$0xf]  ;;  %v2815_v16 = vor.u32 %v3407_v2, %v2812_v3 }
  0xd7   :  { %1920 = vmatpush.bf16.msra.mxu2 %v2559_v25  ;;  %v3135_v25 = vor.u32 %v3487_v17, %v3132_v18  ;;  %v3068_v12 = vld [vmem:[%s5252_s1 + $0x678] sm:$0xf0]  ;;  %v3503_v14 = vld [vmem:[%s5252_s1 + $0x76c] sm:$0xf] }
  0xd8   :  { %1933 = vmatpush.bf16.msra.mxu3 %v2687_v30  ;;  %v2988_v30 = vld [vmem:[%s5252_s1 + $0x5d8] sm:$0xf0]  ;;  %v3071_v18 = vor.u32 %v3471_v11, %v3068_v12  ;;  %v3435_v20 = vld [vmem:[%s5252_s1 + $0x54c] sm:$0xf] }
  0xd9   :  { %1895 = vmatpush.bf16.msra.mxu0 %v2287_v43  ;;  %v2991_v39 = vor.u32 %v3451_v28, %v2988_v30  ;;  %v3415_v43 = vld [vmem:[%s5252_s1 + $0x4ac] sm:$0xf]  ;;  %v3164_v49 = vld [vmem:[%s5252_s1 + $0x738] sm:$0xf0] }
  0xda   :  { %1908 = vmatpush.bf16.msra.mxu1 %v2415_v45  ;;  %v3447_v45 = vld [vmem:[%s5252_s1 + $0x5ac] sm:$0xf]  ;;  %v3148_v61 = vld [vmem:[%s5252_s1 + $0x718] sm:$0xf0] }
  0xdb   :  { %1921 = vmatpush.bf16.msra.mxu2 %v2543_v46  ;;  %v3247_v46 = vor.u32 %v3515_v34, %v3244_v37  ;;  %v2975_v52 = vor.u32 %v3447_v45, %v2972_v47  ;;  %v3499_v28 = vld [vmem:[%s5252_s1 + $0x74c] sm:$0xf]  ;;  %v2908_v45 = vld [vmem:[%s5252_s1 + $0x538] sm:$0xf0] }
  0xdc   :  { %1934 = vmatpush.bf16.msra.mxu3 %v2671_v51  ;;  %v2847_v51 = vor.u32 %v3415_v43, %v2844_v44  ;;  %v3036_v47 = vld [vmem:[%s5252_s1 + $0x638] sm:$0xf0]  ;;  %v3495_v48 = vld [vmem:[%s5252_s1 + $0x72c] sm:$0xf] }
  0xdd   :  { %1896 = vmatpush.bf16.msra.mxu0 %v2271_v58  ;;  %v3084_v58 = vld [vmem:[%s5252_s1 + $0x698] sm:$0xf0]  ;;  %v3491_v60 = vld [vmem:[%s5252_s1 + $0x70c] sm:$0xf] }
  0xde   :  { %1909 = vmatpush.bf16.msra.mxu1 %v2399_v62  ;;  %v2831_v62 = vor.u32 %v3411_v54, %v2828_v55  ;;  %v3087_v1 = vor.u32 %v3475_v56, %v3084_v58  ;;  %v3427_v54 = vld [vmem:[%s5252_s1 + $0x50c] sm:$0xf]  ;;  %v3020_v56 = vld [vmem:[%s5252_s1 + $0x618] sm:$0xf0] }
  0xdf   :  { %1922 = vmatpush.bf16.msra.mxu2 %v2527_v63 }
  0xe0   :  { %1935 = vmatpush.bf16.msra.mxu3 %v2655_v4  ;;  %v3439_v4 = vld [vmem:[%s5252_s1 + $0x56c] sm:$0xf] }
  0xe1   :  { %1897 = vmatpush.bf16.msra.mxu0 %v2255_v15  ;;  %v1691_v63 = vpop.f32.mrf.mxu0  ;;  %v3196_v15 = vld [vmem:[%s5252_s1 + $0x778] sm:$0xf0]  ;;  %v2943_v17 = vor.u32 %v3439_v4, %v2940_v10 }
  0xe2   :  { %1910 = vmatpush.bf16.msra.mxu1 %v2383_v59  ;;  %v1704_v8 = vpop.f32.mrf.mxu1  ;;  %v3403_v59 = vld [vmem:[%s5252_s1 + $0x44c] sm:$0xf] }
  0xe3   :  { %1923 = vmatpush.bf16.msra.mxu2 %v2511_v19  ;;  %v1705_v13 = vadd.f32 %v1704_v8, %v1691_v63  ;;  %v2796_v19 = vld [vmem:[%s5252_s1 + $0x458] sm:$0xf0] }
  0xe4   :  { %1936 = vmatpush.bf16.msra.mxu3 %v2639_v22  ;;  %1898 = vmatmul.bf16.vlgmr.msra.gmra.mxu0 %v3846_v5  ;;  %v3443_v5 = vld [vmem:[%s5252_s1 + $0x58c] sm:$0xf]  ;;  %v3199_v22 = vor.u32 %v3503_v14, %v3196_v15  ;;  %v2799_v30 = vor.u32 %v3403_v59, %v2796_v19 }
  0xe5   :  { %1942 = vmatpush.bf16.msrb.mxu0 %v2879_v23  ;;  %1911 = vmatmul.bf16.vlgmr.msra.gmra.mxu1 %v3850_v7  ;;  %v2956_v7 = vld [vmem:[%s5252_s1 + $0x598] sm:$0xf0] }
  0xe6   :  { %1955 = vmatpush.bf16.msrb.mxu1 %v3007_v24  ;;  %1924 = vmatmul.bf16.vlgmr.msra.gmra.mxu2 %v3819_v57  ;;  %v3228_v57 = vld [vmem:[%s5252_s1 + $0x7b8] sm:$0xf0]  ;;  %v2959_v0 = vor.u32 %v3443_v5, %v2956_v7  ;;  %v3467_v24 = vld [vmem:[%s5252_s1 + $0x64c] sm:$0xf]  ;;  %v3167_v5 = vor.u32 %v3495_v48, %v3164_v49 }
  0xe7   :  { %1968 = vmatpush.bf16.msrb.mxu2 %v3135_v25  ;;  %1937 = vmatmul.bf16.vlgmr.msra.gmra.mxu3 %v3848_v6  ;;  %v3231_v6 = vor.u32 %v3511_v50, %v3228_v57  ;;  %v2924_v23 = vld [vmem:[%s5252_s1 + $0x558] sm:$0xf0]  ;;  %v3459_v7 = vld [vmem:[%s5252_s1 + $0x60c] sm:$0xf] }
  0xe8   :  { %1981 = vmatpush.bf16.msrb.mxu3 %v3263_v29  ;;  %v3052_v25 = vld [vmem:[%s5252_s1 + $0x658] sm:$0xf0]  ;;  %v2927_v34 = vor.u32 %v3435_v20, %v2924_v23 }
  0xe9   :  { %1943 = vmatpush.bf16.msrb.mxu0 %v2863_v38  ;;  %v1717_v21 = vpop.f32.mrf.mxu2  ;;  %v3180_v29 = vld [vmem:[%s5252_s1 + $0x758] sm:$0xf0]  ;;  %v1693_v33 = vpop.f32.mrf.mxu0  ;;  %v3055_v37 = vor.u32 %v3467_v24, %v3052_v25  ;;  %v3399_v38 = vld [vmem:[%s5252_s1 + $0x42c] sm:$0xf] }
  0xea   :  { %1956 = vmatpush.bf16.msrb.mxu1 %v2991_v39  ;;  %v1718_v26 = vadd.f32 %v1717_v21, %v1705_v13  ;;  %v1730_v27 = vpop.f32.mrf.mxu3  ;;  %v2780_v39 = vld [vmem:[%s5252_s1 + $0x438] sm:$0xf0]  ;;  %v1706_v43 = vpop.f32.mrf.mxu1  ;;  %v3183_v44 = vor.u32 %v3499_v28, %v3180_v29 }
  0xeb   :  { %1969 = vmatpush.bf16.msrb.mxu2 %v3119_v41  ;;  %v3431_v41 = vld [vmem:[%s5252_s1 + $0x52c] sm:$0xf]  ;;  %v2783_v50 = vor.u32 %v3399_v38, %v2780_v39 }
  0xec   :  { %1982 = vmatpush.bf16.msrb.mxu3 %v3247_v46  ;;  %v1731_v32 = vadd.f32 %v1730_v27, %v1718_v26  ;;  %v3463_v46 = vld [vmem:[%s5252_s1 + $0x62c] sm:$0xf]  ;;  %v2911_v57 = vor.u32 %v3431_v41, %v2908_v45  ;;  %v2015_v45 = vrot.slane %v4930_v42, 4 }
  0xed   :  { %1944 = vmatpush.bf16.msrb.mxu0 %v2847_v51  ;;  %v3039_v51 = vor.u32 %v3463_v46, %v3036_v47 }
  0xee   :  { %1957 = vmatpush.bf16.msrb.mxu1 %v2975_v52  ;;  %v3395_v52 = vld [vmem:[%s5252_s1 + $0x40c] sm:$0xf]  ;;  %v2016_v49 = vadd.f32 %v2015_v45, %v4930_v42 }
  0xef   :  { %1970 = vmatpush.bf16.msrb.mxu2 %v3103_v53  ;;  %v2764_v53 = vld [vmem:[%s5252_s1 + $0x418] sm:$0xf0] }
  0xf0   :  { %1983 = vmatpush.bf16.msrb.mxu3 %v3231_v6  ;;  %v2892_v6 = vld [vmem:[%s5252_s1 + $0x518] sm:$0xf0] }
  0xf1   :  { %1945 = vmatpush.bf16.msrb.mxu0 %v2831_v62  ;;  %v1719_v55 = vpop.f32.mrf.mxu2  ;;  %v2767_v62 = vor.u32 %v3395_v52, %v2764_v53  ;;  %v2895_v63 = vor.u32 %v3427_v54, %v2892_v6  ;;  %v2017_v54 = vrot.slane %v2016_v49, 2 }
  0xf2   :  { %1958 = vmatpush.bf16.msrb.mxu1 %v2959_v0  ;;  %v1732_v58 = vpop.f32.mrf.mxu3  ;;  %v3023_v0 = vor.u32 %v3459_v7, %v3020_v56 }
  0xf3   :  { %1971 = vmatpush.bf16.msrb.mxu2 %v3087_v1  ;;  %v3151_v1 = vor.u32 %v3491_v60, %v3148_v61  ;;  %v2018_v58 = vadd.f32 %v2017_v54, %v2016_v49 }
  0xf4   :  { %1984 = vmatpush.bf16.msrb.mxu3 %v3215_v9 }
  0xf5   :  { %1946 = vmatpush.bf16.msrb.mxu0 %v2815_v16 }
  0xf6   :  { %1959 = vmatpush.bf16.msrb.mxu1 %v2943_v17 }
  0xf7   :  { %1972 = vmatpush.bf16.msrb.mxu2 %v3071_v18 }
  0xf8   :  { %1985 = vmatpush.bf16.msrb.mxu3 %v3199_v22 }
  0xf9   :  { %1947 = vmatpush.bf16.msrb.mxu0 %v2799_v30 }
  0xfa   :  { %1960 = vmatpush.bf16.msrb.mxu1 %v2927_v34 }
  0xfb   :  { %1973 = vmatpush.bf16.msrb.mxu2 %v3055_v37  ;;  %v3545_v37 = vmov 8.0  }
  0xfc   :  { %1986 = vmatpush.bf16.msrb.mxu3 %v3183_v44  ;;  %3525 = vrcp.f32 %v3545_v37 }
  0xfd   :  { %1948 = vmatpush.bf16.msrb.mxu0 %v2783_v50 }
  0xfe   :  { %1961 = vmatpush.bf16.msrb.mxu1 %v2911_v57 }
  0xff   :  { %1974 = vmatpush.bf16.msrb.mxu2 %v3039_v51 }
 0x100   :  { %1987 = vmatpush.bf16.msrb.mxu3 %v3167_v5 }
 0x101   :  { %1949 = vmatpush.bf16.msrb.mxu0 %v2767_v62  ;;  %v1743_v2 = vpop.f32.mrf.mxu0 }
 0x102   :  { %1962 = vmatpush.bf16.msrb.mxu1 %v2895_v63  ;;  %v1744_v3 = vadd.f32 %v1743_v2, %v1731_v32  ;;  %v1756_v4 = vpop.f32.mrf.mxu1  ;;  %v3526_v43 = vpop.eup %3525 }
 0x103   :  { %1975 = vmatpush.bf16.msrb.mxu2 %v3023_v0  ;;  %v2040_v47 = vmul.f32 8.0, %v3526_v43  ;;  %vm2044_vm0 = vweird.f32 %v3526_v43 }
 0x104   :  { %1988 = vmatpush.bf16.msrb.mxu3 %v3151_v1  ;;  %1950 = vmatmul.bf16.vlgmr.msrb.gmra.mxu0 %v4031_v35  ;;  %v1757_v8 = vadd.f32 %v1756_v4, %v1744_v3  ;;  %v2019_v1 = vrot.slane %v2018_v58, 1 }
 0x105   :  { %1963 = vmatmul.bf16.vlgmr.msrb.gmra.mxu1 %v4041_v40  ;;  %v2041_v51 = vsub.f32 1.0, %v2040_v47 }
 0x106   :  { %1976 = vmatmul.bf16.vlgmr.msrb.gmra.mxu2 %v4020_v31 }
 0x107   :  { %1989 = vmatmul.bf16.vlgmr.msrb.gmra.mxu3 %v4033_v36  ;;  %v2042_v5 = vmul.f32 %v3526_v43, %v2041_v51 }
 0x109   :  { %v1769_v9 = vpop.f32.mrf.mxu2  ;;  %v1745_v13 = vpop.f32.mrf.mxu0  ;;  %v2043_v62 = vadd.f32 %v3526_v43, %v2042_v5 }
 0x10a   :  { %v1770_v10 = vadd.f32 %v1769_v9, %v1757_v8  ;;  %v1782_v11 = vpop.f32.mrf.mxu3  ;;  %v1758_v14 = vpop.f32.mrf.mxu1 }
 0x10b   :  { %v5190_v3 = vsel %vm2044_vm0, %v3526_v43, %v2043_v62  ;;  %vm2228_vm0 = vcmask 7168  }
 0x10c   :  { %v5180_v12 = vadd.f32 %v1782_v11, %v1770_v10  ;;  %v2020_v10 = vadd.f32 %v2019_v1, %v2018_v58 }
 0x10e   :  { %v2021_v39 = vrot.slane %v5180_v12, 4  ;;  %v5201_v14 = vmul.f32 %v5190_v3, %v2020_v10 }
 0x110   :  { %v2022_v44 = vadd.f32 %v2021_v39, %v5180_v12 }
 0x111   :  { %v1771_v15 = vpop.f32.mrf.mxu2 }
 0x112   :  { %v1784_v16 = vpop.f32.mrf.mxu3  ;;  %v2023_v48 = vrot.slane %v2022_v44, 2 }
 0x114   :  { %v2024_v53 = vadd.f32 %v2023_v48, %v2022_v44 }
 0x116   :  { %v2025_v7 = vrot.slane %v2024_v53, 1 }
 0x118   :  { %v2026_v0 = vadd.f32 %v2025_v7, %v2024_v53 }
 0x11a   :  { %v5193_v8 = vmul.f32 %v5190_v3, %v2026_v0 }
 0x11c   :  { %v2051_v13 = vsub.f32 %v5180_v12, %v5193_v8 }
 0x121   :  { %v1795_v35 = vpop.f32.mrf.mxu0 }
 0x122   :  { %v1808_v17 = vpop.f32.mrf.mxu1 }
 0x123   :  { %v1809_v40 = vadd.f32 %v1808_v17, %v1795_v35  ;;  %v2055_v35 = vmul.f32 %v2051_v13, %v2051_v13  ;;  %v2050_v17 = vsub.f32 %v4930_v42, %v5201_v14 }
 0x129   :  { %v1821_v18 = vpop.f32.mrf.mxu2  ;;  %v1797_v19 = vpop.f32.mrf.mxu0 }
 0x12a   :  { %v1822_v31 = vadd.f32 %v1821_v18, %v1809_v40  ;;  %v1834_v59 = vpop.f32.mrf.mxu3  ;;  %v1810_v20 = vpop.f32.mrf.mxu1 }
 0x12c   :  { %v1835_v36 = vadd.f32 %v1834_v59, %v1822_v31  ;;  %v2064_v31 = vrot.slane %v2055_v35, 4  ;;  %v2054_v59 = vmul.f32 %v2050_v17, %v2050_v17 }
 0x131   :  { %v1823_v21 = vpop.f32.mrf.mxu2 }
 0x132   :  { %v1836_v22 = vpop.f32.mrf.mxu3 }
 0x133   :  { %v2065_v22 = vadd.f32 %v2064_v31, %v2055_v35 }
 0x141   :  { %v1847_v23 = vpop.f32.mrf.mxu0 }
 0x142   :  { %v1848_v24 = vadd.f32 %v1847_v23, %v1835_v36  ;;  %v1860_v25 = vpop.f32.mrf.mxu1 }
 0x144   :  { %v1861_v26 = vadd.f32 %v1860_v25, %v1848_v24  ;;  %v2058_v24 = vrot.slane %v2054_v59, 4 }
 0x149   :  { %v1873_v27 = vpop.f32.mrf.mxu2  ;;  %v1849_v29 = vpop.f32.mrf.mxu0 }
 0x14a   :  { %v1886_v28 = vpop.f32.mrf.mxu3  ;;  %v1862_v30 = vpop.f32.mrf.mxu1  ;;  %v1874_v33 = vadd.f32 %v1873_v27, %v1861_v26  ;;  %v2066_v26 = vrot.slane %v2065_v22, 2 }
 0x14c   :  { %v5182_v38 = vadd.f32 %v1886_v28, %v1874_v33  ;;  %v2059_v28 = vadd.f32 %v2058_v24, %v2054_v59  ;;  %v2067_v39 = vadd.f32 %v2066_v26, %v2065_v22 }
 0x14e   :  { %v2027_v41 = vrot.slane %v5182_v38, 4  ;;  %v2060_v43 = vrot.slane %v2059_v28, 2 }
 0x150   :  { %v2028_v46 = vadd.f32 %v2027_v41, %v5182_v38  ;;  %v2061_v48 = vadd.f32 %v2060_v43, %v2059_v28 }
 0x151   :  { %v1875_v32 = vpop.f32.mrf.mxu2 }
 0x152   :  { %v1888_v34 = vpop.f32.mrf.mxu3  ;;  %v2029_v50 = vrot.slane %v2028_v46, 2  ;;  %v2062_v54 = vrot.slane %v2061_v48, 1 }
 0x154   :  { %v2030_v55 = vadd.f32 %v2029_v50, %v2028_v46  ;;  %v2068_v46 = vrot.slane %v2067_v39, 1 }
 0x156   :  { %v2031_v60 = vrot.slane %v2030_v55, 1 }
 0x158   :  { %v2032_v2 = vadd.f32 %v2031_v60, %v2030_v55 }
 0x15a   :  { %v5196_v11 = vmul.f32 %v5190_v3, %v2032_v2 }
 0x15c   :  { %v2052_v15 = vsub.f32 %v5182_v38, %v5196_v11 }
 0x15e   :  { %v2056_v40 = vmul.f32 %v2052_v15, %v2052_v15 }
 0x160   :  { %v2070_v36 = vrot.slane %v2056_v40, 4 }
 0x161   :  { %v1899_v57 = vpop.f32.mrf.mxu0 }
 0x162   :  { %v1912_v52 = vpop.f32.mrf.mxu1  ;;  %v2071_v25 = vadd.f32 %v2070_v36, %v2056_v40 }
 0x163   :  { %v1913_v16 = vadd.f32 %v1912_v52, %v1899_v57  ;;  %v2069_v52 = vadd.f32 %v2068_v46, %v2067_v39 }
 0x164   :  { %v2072_v30 = vrot.slane %v2071_v25, 2 }
 0x166   :  { %v2073_v44 = vadd.f32 %v2072_v30, %v2071_v25 }
 0x168   :  { %v2074_v50 = vrot.slane %v2073_v44, 1 }
 0x169   :  { %v1925_v6 = vpop.f32.mrf.mxu2  ;;  %v1901_v61 = vpop.f32.mrf.mxu0 }
 0x16a   :  { %v1938_v56 = vpop.f32.mrf.mxu3  ;;  %v1914_v63 = vpop.f32.mrf.mxu1  ;;  %v1926_v18 = vadd.f32 %v1925_v6, %v1913_v16  ;;  %v2075_v55 = vadd.f32 %v2074_v50, %v2073_v44  ;;  %v2083_v6 = vmul.f32 %v2069_v52, %v5190_v3  ;;  %v2009_v50 = vld [vmem:[%s5254_s2] ss:$4 sm:$0xf] }
 0x16c   :  { %v1939_v19 = vadd.f32 %v1938_v56, %v1926_v18  ;;  %v2063_v56 = vadd.f32 %v2062_v54, %v2061_v48  ;;  %v2084_v58 = vmul.f32 %v2075_v55, %v5190_v3  ;;  %v2087_v61 = vadd.f32 1e-05, %v2083_v6 }
 0x16e   :  { %v2082_v63 = vmul.f32 %v2063_v56, %v5190_v3  ;;  %v2088_v0 = vadd.f32 1e-05, %v2084_v58  ;;  %3527 = vrsqrt.f32 %v2087_v61  ;;  %vm2106_vm2 = vweird.f32 %v2087_v61 }
 0x170   :  { %3529 = vrsqrt.f32 %v2088_v0  ;;  %vm2116_vm5 = vweird.f32 %v2088_v0 }
 0x171   :  { %v1927_v4 = vpop.f32.mrf.mxu2 }
 0x172   :  { %v1940_v9 = vpop.f32.mrf.mxu3  ;;  %v2086_v4 = vadd.f32 1e-05, %v2082_v63 }
 0x174   :  { %3531 = vrsqrt.f32 %v2086_v4  ;;  %v3528_v13 = vpop.eup %3527  ;;  %vm2096_vm11 = vweird.f32 %v2086_v4 }
 0x175   :  { %v2101_v17 = vmul.f32 %v3528_v13, %v2087_v61  ;;  %vm2107_vm1 = vweird.f32 %v3528_v13 }
 0x176   :  { %v3530_v16 = vpop.eup %3529  ;;  %vm2108_vm4 = vmor %vm2106_vm2, %vm2107_vm1  ;;  %vm2234_vm1 = vcmask 15368  }
 0x177   :  { %v2111_v31 = vmul.f32 %v3530_v16, %v2088_v0  ;;  %v2102_v36 = vmul.f32 %v3528_v13, %v2101_v17  ;;  %vm2117_vm3 = vweird.f32 %v3530_v16 }
 0x178   :  { %vm2118_vm8 = vmor %vm2116_vm5, %vm2117_vm3 }
 0x179   :  { %v2103_v22 = vmul.f32 0.5, %v2102_v36 }
 0x17a   :  { %v3532_v18 = vpop.eup %3531 }
 0x17b   :  { %v2104_v25 = vsub.f32 1.5, %v2103_v22  ;;  %vm2097_vm7 = vweird.f32 %v3532_v18 }
 0x17c   :  { %vm2098_vm14 = vmor %vm2096_vm11, %vm2097_vm7 }
 0x17d   :  { %v2105_v30 = vmul.f32 %v3528_v13, %v2104_v25 }
 0x181   :  { %v1951_v20 = vpop.f32.mrf.mxu0 }
 0x182   :  { %v1964_v21 = vpop.f32.mrf.mxu1  ;;  %v1952_v23 = vadd.f32 %v1951_v20, %v1939_v19  ;;  %v2091_v19 = vmul.f32 %v3532_v18, %v2086_v4 }
 0x184   :  { %v1965_v27 = vadd.f32 %v1964_v21, %v1952_v23  ;;  %v2112_v21 = vmul.f32 %v3530_v16, %v2111_v31  ;;  %v2092_v23 = vmul.f32 %v3532_v18, %v2091_v19 }
 0x186   :  { %v2113_v24 = vmul.f32 0.5, %v2112_v21 }
 0x188   :  { %v2114_v28 = vsub.f32 1.5, %v2113_v24 }
 0x189   :  { %v1977_v29 = vpop.f32.mrf.mxu2  ;;  %v1953_v34 = vpop.f32.mrf.mxu0 }
 0x18a   :  { %v1978_v32 = vadd.f32 %v1977_v29, %v1965_v27  ;;  %v1990_v33 = vpop.f32.mrf.mxu3  ;;  %v1966_v37 = vpop.f32.mrf.mxu1  ;;  %v2093_v27 = vmul.f32 0.5, %v2092_v23  ;;  %v2115_v34 = vmul.f32 %v3530_v16, %v2114_v28 }
 0x18b   :  { %v2109_v37 = vsel %vm2108_vm4, %v3528_v13, %v2105_v30 }
 0x18c   :  { %v5207_v41 = vadd.f32 %v1990_v33, %v1978_v32  ;;  %v2094_v33 = vsub.f32 1.5, %v2093_v27  ;;  %v2119_v44 = vsel %vm2118_vm8, %v3530_v16, %v2115_v34  ;;  %v2134_v46 = vrot.slane %v2109_v37, 7 }
 0x18d   :  { %v2135_v48 = vrot.slane %v2119_v44, 6 }
 0x18e   :  { %v2033_v45 = vrot.slane %v5207_v41, 4  ;;  %v2095_v43 = vmul.f32 %v3532_v18, %v2094_v33 }
 0x190   :  { %v2034_v47 = vadd.f32 %v2033_v45, %v5207_v41 }
 0x191   :  { %v1979_v49 = vpop.f32.mrf.mxu2 }
 0x192   :  { %v2035_v57 = vrot.slane %v2034_v47, 2  ;;  %v1992_v51 = vpop.f32.mrf.mxu3 }
 0x194   :  { %v2036_v53 = vadd.f32 %v2035_v57, %v2034_v47  ;;  %v2099_v57 = vsel %vm2098_vm14, %v3532_v18, %v2095_v43 }
 0x195   :  { %v2138_v51 = vsel %vm2137_vm12, %v2099_v57, %v2134_v46 }
 0x196   :  { %v2037_v5 = vrot.slane %v2036_v53, 1 }
 0x198   :  { %v2038_v7 = vadd.f32 %v2037_v5, %v2036_v53 }
 0x19a   :  { %v5214_v60 = vmul.f32 %v5190_v3, %v2038_v7 }
 0x19c   :  { %v2053_v62 = vsub.f32 %v5207_v41, %v5214_v60 }
 0x19e   :  { %v2057_v1 = vmul.f32 %v2053_v62, %v2053_v62 }
 0x1a0   :  { %v2076_v2 = vrot.slane %v2057_v1, 4 }
 0x1a2   :  { %v2077_v9 = vadd.f32 %v2076_v2, %v2057_v1  ;;  %v3264_v2 = vld [vmem:[%s5254_s2 + $0x1] ss:$4 sm:$0xf] }
 0x1a4   :  { %v2078_v10 = vrot.slane %v2077_v9, 2 }
 0x1a6   :  { %v2079_v15 = vadd.f32 %v2078_v10, %v2077_v9 }
 0x1a8   :  { %v2080_v35 = vrot.slane %v2079_v15, 1 }
 0x1aa   :  { %v2081_v40 = vadd.f32 %v2080_v35, %v2079_v15 }
 0x1ac   :  { %v2085_v59 = vmul.f32 %v2081_v40, %v5190_v3 }
 0x1ae   :  { %v2089_v20 = vadd.f32 1e-05, %v2085_v59 }
 0x1b0   :  { %3533 = vrsqrt.f32 %v2089_v20  ;;  %vm2126_vm9 = vweird.f32 %v2089_v20 }
 0x1b6   :  { %v3534_v26 = vpop.eup %3533 }
 0x1b7   :  { %v2121_v29 = vmul.f32 %v3534_v26, %v2089_v20  ;;  %vm2127_vm6 = vweird.f32 %v3534_v26 }
 0x1b8   :  { %vm2128_vm10 = vmor %vm2126_vm9, %vm2127_vm6 }
 0x1b9   :  { %v2122_v32 = vmul.f32 %v3534_v26, %v2121_v29 }
 0x1bb   :  { %v2123_v3 = vmul.f32 0.5, %v2122_v32 }
 0x1bd   :  { %v2124_v39 = vsub.f32 1.5, %v2123_v3 }
 0x1bf   :  { %v2125_v45 = vmul.f32 %v3534_v26, %v2124_v39 }
 0x1c1   :  { %v2129_v47 = vsel %vm2128_vm10, %v3534_v26, %v2125_v45 }
 0x1c2   :  { %v2136_v49 = vrot.slane %v2129_v47, 5 }
 0x1c4   :  { %v2140_v52 = vsel %vm2139_vm13, %v2135_v48, %v2136_v49  ;;  %v3524_v48 = vld [vmem:[%s5254_s2 + $0x3] ss:$0 sm:$0xff] }
 0x1c5   :  { %v2142_v53 = vsel %vm2141_vm15, %v2138_v51, %v2140_v52 }
 0x1c6   :  { %v2144_v54 = vmul.f32 %v2142_v53, %v2009_v50 }
 0x1c8   :  { %v2149_v55 = vperm.slane %v2144_v54, 3  ;;  %v2146_v5 = vperm.slane %v2144_v54, 0  ;;  %v2147_v6 = vperm.slane %v2144_v54, 1  ;;  %v2148_v7 = vperm.slane %v2144_v54, 2 }
 0x1ca   :  { %v2157_v56 = vmul.f32 %v2149_v55, %v5214_v60  ;;  %v2155_v58 = vmul.f32 %v2147_v6, %v5193_v8  ;;  %v2156_v61 = vmul.f32 %v2148_v7, %v5196_v11  ;;  %v2154_v63 = vmul.f32 %v2146_v5, %v5201_v14 }
 0x1cb   :  { %v2173_v8 = vmul.f32 %v2149_v55, %v5207_v41  ;;  %v2170_v11 = vmul.f32 %v2146_v5, %v4930_v42  ;;  %v2171_v13 = vmul.f32 %v2147_v6, %v5180_v12  ;;  %v2172_v14 = vmul.f32 %v2148_v7, %v5182_v38  ;;  %v3265_v42 = vld [vmem:[%s5254_s2 + $0x2] ss:$4 sm:$0xf] }
 0x1cc   :  { %v2164_v62 = vrot.slane %v2157_v56, 5  ;;  %v2162_v0 = vrot.slane %v2155_v58, 7  ;;  %v2163_v1 = vrot.slane %v2156_v61, 6  ;;  %v2204_v22 = vperm.slane %v3265_v42, 0 }
 0x1cd   :  { %v2205_v25 = vperm.slane %v3265_v42, 1  ;;  %v2206_v32 = vperm.slane %v3265_v42, 2  ;;  %v2207_v37 = vperm.slane %v3265_v42, 3 }
 0x1ce   :  { %v2165_v4 = vsel %vm2137_vm12, %v2154_v63, %v2162_v0  ;;  %v2166_v9 = vsel %vm2139_vm13, %v2163_v1, %v2164_v62 }
 0x1cf   :  { %v2167_v10 = vsel %vm2141_vm15, %v2165_v4, %v2166_v9 }
 0x1d0   :  { %v2169_v60 = vsub.f32 %v3264_v2, %v2167_v10 }
 0x1d2   :  { %v2175_v15 = vperm.slane %v2169_v60, 0  ;;  %v2176_v16 = vperm.slane %v2169_v60, 1  ;;  %v2177_v35 = vperm.slane %v2169_v60, 2  ;;  %v2178_v17 = vperm.slane %v2169_v60, 3 }
 0x1d4   :  { %v2183_v40 = vadd.f32 %v2175_v15, %v2170_v11  ;;  %v2184_v18 = vadd.f32 %v2176_v16, %v2171_v13  ;;  %v2185_v31 = vadd.f32 %v2177_v35, %v2172_v14  ;;  %v2186_v59 = vadd.f32 %v2178_v17, %v2173_v8 }
 0x1d6   :  { %v2187_v36 = vmul.f32 0.5, %v2183_v40  ;;  %v2188_v19 = vmul.f32 0.5, %v2184_v18  ;;  %v2189_v20 = vmul.f32 0.5, %v2185_v31  ;;  %v2190_v21 = vmul.f32 0.5, %v2186_v59 }
 0x1d8   :  { %3535 = vtanh.f32 %v2187_v36 }
 0x1d9   :  { %3537 = vtanh.f32 %v2188_v19 }
 0x1da   :  { %3539 = vtanh.f32 %v2189_v20 }
 0x1db   :  { %3541 = vtanh.f32 %v2190_v21 }
 0x1de   :  { %v3536_v12 = vpop.eup %3535 }
 0x1df   :  { %v3538_v38 = vpop.eup %3537  ;;  %v2195_v41 = vmul.f32 0.5, %v3536_v12 }
 0x1e0   :  { %v3540_v23 = vpop.eup %3539  ;;  %v2196_v24 = vmul.f32 0.5, %v3538_v38 }
 0x1e1   :  { %v3542_v26 = vpop.eup %3541  ;;  %v2197_v27 = vmul.f32 0.5, %v3540_v23  ;;  %v2199_v28 = vadd.f32 0.5, %v2195_v41 }
 0x1e2   :  { %v2198_v29 = vmul.f32 0.5, %v3542_v26  ;;  %v2200_v30 = vadd.f32 0.5, %v2196_v24 }
 0x1e3   :  { %v2201_v33 = vadd.f32 0.5, %v2197_v27  ;;  %v2212_v34 = vmul.f32 %v2204_v22, %v2199_v28 }
 0x1e4   :  { %v2202_v3 = vadd.f32 0.5, %v2198_v29  ;;  %v2213_v39 = vmul.f32 %v2205_v25, %v2200_v30 }
 0x1e5   :  { %v2214_v43 = vmul.f32 %v2206_v32, %v2201_v33 }
 0x1e6   :  { %v2216_v44 = vadd.f32 %v2213_v39, %v2212_v34  ;;  %v2215_v45 = vmul.f32 %v2207_v37, %v2202_v3 }
 0x1e8   :  { %v2217_v46 = vadd.f32 %v2216_v44, %v2214_v43 }
 0x1ea   :  { %v2218_v47 = vadd.f32 %v2217_v46, %v2215_v45 }
 0x1ec   :  { %2219 = vadd.xlane.f32.xlu0 %v2218_v47 }
 0x25f   :  { %v2220_v49 = vpop.xlane.xlu0 %2219 }
 0x260   :  { %v2222_v50 = vadd.f32 %v3524_v48, %v2220_v49 }
 0x262   :  { %v2223_v57 = vmul.f32 0.5, %v2222_v50 }
 0x264   :  { %3543 = vtanh.f32 %v2223_v57 }
 0x26a   :  { %v3544_v51 = vpop.eup %3543 }
 0x26b   :  { %v2225_v52 = vmul.f32 0.5, %v3544_v51 }
 0x26d   :  { %v2226_v53 = vadd.f32 0.5, %v2225_v52 }
 0x26f   :  { %v2227_v54 = vsub.f32 1.0, %v2226_v53  ;;  %2231 = vrot.lane.b32.xlu0 %v2226_v53, %s3546_s6 }
 0x271   :  { %2229 = vst.msk [vmem:[%s5255_s3] sm:$0xff] %vm2228_vm0, %v2227_v54 }
 0x2e1   :  { %v2232_v55 = vpop.permute.xlu0 %2231 }
 0x2e2   :  { %2235 = vst.msk [vmem:[%s5255_s3] sm:$0xff] %vm2234_vm1, %v2232_v55 }

</bundles_post_ra>
